<compile_context>
chip_gen: v7x
topology: tpu7x:2x2x1
jax: 0.10.0
libtpu: 0.0.40
codegen_flags: <defaults>
</compile_context>

<pallas_src>
import functools

import jax
import jax.numpy as jnp
from jax import lax
from jax.experimental import pallas as pl
from jax.experimental.pallas import tpu as pltpu

N_BANDS = 6          # PsychoacousticFeature(kernel_sizes=[128]*6).n_bands
CH = 64              # network_channels
IN_DIM = N_BANDS * CH
NEG_SLOPE = 0.2

# (kernel, stride, pad, has_leaky_relu) for each Conv1d in self.summary
CONV_CFGS = [(3, 2, 1, True), (3, 2, 1, True), (3, 2, 1, True), (3, 2, 1, True),
             (2, 2, 0, True), (1, 1, 0, False)]

# Set to jnp.bfloat16 on v6e/v7x for full-rate MXU (accumulation stays f32 via
# preferred_element_type); f32 kept here so the test matches the f32 reference tightly.
COMPUTE_DTYPE = jnp.float32


def _conv_lens(T):
    t_outs, t = [], T
    for (k, s, p, _a) in CONV_CFGS:
        t = (t + 2 * p - k) // s + 1
        assert t >= 1, "sequence too short for the conv stack"
        t_outs.append(t)
    return tuple(t_outs)


# ---------------------------------------------------------------------------
# Fused Pallas kernel: Linear + 6 convs + LeakyReLUs for B_TILE batch elements
# ---------------------------------------------------------------------------
def _fused_kernel(b_tile, t_in, t_outs, row_offs, buf_slot, *refs):
    n_conv = len(CONV_CFGS)
    n_in = 3 + 2 * n_conv
    in_refs = refs[:n_in]
    out_ref = refs[n_in]
    bufs = refs[n_in + 1:]

    x_ref, rw_ref, rb_ref = in_refs[0], in_refs[1], in_refs[2]
    conv_w = in_refs[3::2]           # 6 refs, each (k*CH, CH) packed along K
    conv_b = in_refs[4::2]           # 6 refs, each (1, CH)

    f32 = jnp.float32
    half = t_in // 2

    # ---- reducer: one flattened (B_TILE*T, 384) @ (384, 64) MXU matmul --------------
    xv = x_ref[...]
    if t_in % 8 == 0:
        x2 = xv.reshape(b_tile * t_in, IN_DIM)       # layout-trivial leading-dim merge
    else:
        x2 = jnp.concatenate([xv[b] for b in range(b_tile)], axis=0)
    if x2.dtype != COMPUTE_DTYPE:
        x2 = x2.astype(COMPUTE_DTYPE)
    h = jnp.dot(x2, rw_ref[...], preferred_element_type=f32) + rb_ref[...]

    # reducer feature, lane-dense: lanes[0:64]=h[t<T/2], lanes[64:128]=h[t>=T/2]
    for b in range(b_tile):
        hb = h[b * t_in:(b + 1) * t_in]
        out_ref[b, pl.ds(row_offs[0], half), :] = jnp.concatenate(
            [hb[:half], hb[half:]], axis=-1)

    # ---- conv stack: strided taps folded into a single K=k*64 contraction -----------
    cur = h                          # (B_TILE * t_cur, CH) f32, batch flattened in rows
    t_cur = t_in
    for i, (k, s, p, act) in enumerate(CONV_CFGS):
        t_next = t_outs[i]
        w_ref, b_ref = conv_w[i], conv_b[i]

        if buf_slot[i] < 0:                          # 1x1 stride-1 conv: plain matmul
            lhs = cur
        else:
            buf = bufs[buf_slot[i]]                  # (B_TILE*(t_cur+2p), CH) scratch
            t_pad = t_cur + 2 * p
            for b in range(b_tile):
                base = b * t_pad
                if p:                                # zero ONLY the pad rows
                    zrow = jnp.zeros((p, CH), buf.dtype)
                    buf[pl.ds(base, p), :] = zrow
                    buf[pl.ds(base + p + t_cur, p), :] = zrow
                buf[pl.ds(base + p, t_cur), :] = (
                    cur[b * t_cur:(b + 1) * t_cur].astype(buf.dtype))
            # k strided taps lane-concatenated -> (B_TILE*t_next, k*64) LHS
            parts = []
            for b in range(b_tile):
                base = b * t_pad
                taps = [buf[pl.ds(base + kk, t_next, stride=s), :] for kk in range(k)]
                parts.append(jnp.concatenate(taps, axis=-1) if k > 1 else taps[0])
            lhs = jnp.concatenate(parts, axis=0) if b_tile > 1 else parts[0]

        if lhs.dtype != COMPUTE_DTYPE:
            lhs = lhs.astype(COMPUTE_DTYPE)
        pre = jnp.dot(lhs, w_ref[...], preferred_element_type=f32) + b_ref[...]
        post = jnp.where(pre >= 0, pre, NEG_SLOPE * pre) if act else pre

        # lane-dense [pre | act] rows written into the single coalesced output slab
        for b in range(b_tile):
            pb = pre[b * t_next:(b + 1) * t_next]
            qb = post[b * t_next:(b + 1) * t_next]
            out_ref[b, pl.ds(row_offs[1 + i], t_next), :] = jnp.concatenate(
                [pb, qb], axis=-1)

        cur = post
        t_cur = t_next


# ---------------------------------------------------------------------------
# pallas_call builder (cached per (B, T))
# ---------------------------------------------------------------------------
@functools.lru_cache(maxsize=None)
def _build_fused_forward(B, T):
    assert T % 2 == 0, "T must be even (lane-dense packing of the reducer feature)"
    t_outs = _conv_lens(T)
    n_conv = len(CONV_CFGS)

    # Row layout of the single coalesced (B, n_rows, 128) output slab:
    #   rows [0, T//2)          : reducer feature, lanes [0:64]=t<T/2, [64:128]=t>=T/2
    #   rows [off_i, off_i+t_i) : conv i, lanes [0:64]=pre, [64:128]=LeakyReLU(pre)
    #                             (final conv has no activation; both halves hold pre)
    row_offs = [0]
    n_rows = T // 2
    for t in t_outs:
        row_offs.append(n_rows)
        n_rows += t
    row_offs = tuple(row_offs)

    itemsize = jnp.dtype(COMPUTE_DTYPE).itemsize
    conv_in_lens = [T] + list(t_outs[:-1])

    def est_bytes(bt):
        in_b = 2 * bt * T * IN_DIM * 4               # double-buffered input block
        out_b = 2 * bt * n_rows * 128 * 4            # double-buffered output slab
        w_b = 2 * ((IN_DIM * CH + sum(k * CH * CH for (k, _, _, _) in CONV_CFGS))
                   * itemsize + (n_conv + 1) * CH * 4)
        scr = sum(bt * (t_i + 2 * p) * CH * itemsize
                  for t_i, (k, s, p, _a) in zip(conv_in_lens, CONV_CFGS)
                  if not (k == 1 and s == 1 and p == 0))
        return in_b + out_b + w_b + scr

    # B_TILE: as many batch elements per grid step as the VMEM budget allows (the
    # kernel is per-step-overhead / MXU-latency bound).  For larger B keep >=2 grid
    # steps so "parallel" can still shard across the 2 TensorCores on v7x.
    budget = 28 << 20                                # safe under v7x 32 MiB scoped default
    b_tile = 1
    for d in range(B, 0, -1):
        if B % d:
            continue
        if B >= 4 and d > B // 2:
            continue
        if est_bytes(d) <= budget:
            b_tile = d
            break

    in_specs = [pl.BlockSpec((b_tile, T, IN_DIM), lambda i: (i, 0, 0)),
                pl.BlockSpec((IN_DIM, CH), lambda i: (0, 0)),
                pl.BlockSpec((1, CH), lambda i: (0, 0))]
    for (k, _s, _p, _a) in CONV_CFGS:
        in_specs.append(pl.BlockSpec((k * CH, CH), lambda i: (0, 0)))   # packed weight
        in_specs.append(pl.BlockSpec((1, CH), lambda i: (0, 0)))

    out_specs = pl.BlockSpec((b_tile, n_rows, 128), lambda i: (i, 0, 0))
    out_shape = jax.ShapeDtypeStruct((B, n_rows, 128), jnp.float32)

    # per-layer padded-activation scratch buffers (none for the pointwise conv)
    scratch, buf_slot = [], []
    for t_i, (k, s, p, _a) in zip(conv_in_lens, CONV_CFGS):
        if k == 1 and s == 1 and p == 0:
            buf_slot.append(-1)
        else:
            buf_slot.append(len(scratch))
            scratch.append(pltpu.VMEM((b_tile * (t_i + 2 * p), CH), COMPUTE_DTYPE))

    # advisory cost estimate so XLA schedules the tiny custom call sensibly
    flops = 2 * B * T * IN_DIM * CH
    bytes_accessed = B * T * IN_DIM * 4 + (IN_DIM * CH + CH) * 4
    for i, (k, _s, _p, _a) in enumerate(CONV_CFGS):
        flops += 2 * B * t_outs[i] * k * CH * CH
        bytes_accessed += (k * CH * CH + CH) * 4
    bytes_accessed += B * n_rows * 128 * 4

    kernel = functools.partial(_fused_kernel, b_tile, T, t_outs, row_offs,
                               tuple(buf_slot))

    call = pl.pallas_call(
        kernel,
        grid_spec=pltpu.PrefetchScalarGridSpec(
            num_scalar_prefetch=0,
            grid=(B // b_tile,),
            in_specs=in_specs,
            out_specs=out_specs,
            scratch_shapes=scratch),
        out_shape=out_shape,
        compiler_params=pltpu.CompilerParams(
            dimension_semantics=("parallel",),
            vmem_limit_bytes=int(min(96 << 20, max(16 << 20, 2 * est_bytes(b_tile))))),
        cost_estimate=pl.CostEstimate(flops=flops, transcendentals=0,
                                      bytes_accessed=bytes_accessed),
    )
    return call, t_outs, row_offs


# ---------------------------------------------------------------------------
# Parameters & forward wrapper
# ---------------------------------------------------------------------------
def init_params(key):
    """Deterministic synthetic weights with the module's shapes.

    Conv weights are stored as (K, C_in, C_out) = transpose(torch_weight, (2,1,0));
    preserve exactly this permutation when loading real PyTorch checkpoints.
    """
    params = {}
    key, k1, k2 = jax.random.split(key, 3)
    params["red_w"] = jax.random.normal(k1, (IN_DIM, CH), jnp.float32) * 0.05
    params["red_b"] = jax.random.normal(k2, (1, CH), jnp.float32) * 0.01
    for i, (k, _s, _p, _a) in enumerate(CONV_CFGS):
        key, kw, kb = jax.random.split(key, 3)
        w_torch = jax.random.normal(kw, (CH, CH, k), jnp.float32) * 0.05  # (C_out,C_in,K)
        params[f"conv{i}_w"] = jnp.transpose(w_torch, (2, 1, 0))          # (K,C_in,C_out)
        params[f"conv{i}_b"] = jax.random.normal(kb, (1, CH), jnp.float32) * 0.01
    return params


def summarizer_forward(x, params, ncl_features=False):
    """x: (B, T, n_bands*64) f32 -> (out (B, T_final, 64), 12 features).

    Features default to channels-last (B, T, C); set ncl_features=True to get
    PyTorch's (B, C, T) layout for the conv/LeakyReLU features.
    """
    B, T, D = x.shape
    assert D == IN_DIM
    fused, t_outs, row_offs = _build_fused_forward(B, T)

    # Pack + pre-cast weights once in the wrapper (hoists the per-step casts out of
    # the kernel; tap kk of conv i occupies weight rows [kk*64, (kk+1)*64)).
    args = [x, params["red_w"].astype(COMPUTE_DTYPE), params["red_b"]]
    for i, (k, _s, _p, _a) in enumerate(CONV_CFGS):
        args.append(params[f"conv{i}_w"].reshape(k * CH, CH).astype(COMPUTE_DTYPE))
        args.append(params[f"conv{i}_b"])
    slab = fused(*args)                              # (B, n_rows, 128) coalesced output

    half = T // 2
    red = jnp.concatenate([slab[:, :half, :CH], slab[:, :half, CH:]], axis=1)  # (B,T,C)
    features = [red]
    cur = None
    for i, (_k, _s, _p, a) in enumerate(CONV_CFGS):
        off, t = row_offs[1 + i], t_outs[i]
        pre = slab[:, off:off + t, :CH]
        if a:
            post = slab[:, off:off + t, CH:]
            feats_i = [pre, post]
            cur = post
        else:
            feats_i = [pre]
            cur = pre
        if ncl_features:
            feats_i = [jnp.transpose(f, (0, 2, 1)) for f in feats_i]   # PyTorch NCL
        features.extend(feats_i)

    # PyTorch returns x.permute(0,2,1) -> (B, T_final, C); `cur` is already that layout.
    return cur, features


# ---------------------------------------------------------------------------
# Pure-JAX reference (for correctness check)
# ---------------------------------------------------------------------------
def reference_forward(x, params):
    B, T, D = x.shape
    h = jnp.dot(x.reshape(B * T, D), params["red_w"],
                precision=lax.Precision.HIGHEST) + params["red_b"]
    h = h.reshape(B, T, CH)
    feats = [h]
    cur = jnp.transpose(h, (0, 2, 1))                         # NCL
    for i, (k, s, p, a) in enumerate(CONV_CFGS):
        w = jnp.transpose(params[f"conv{i}_w"], (2, 1, 0))    # (C_out, C_in, K)
        pre = lax.conv_general_dilated(cur, w, (s,), [(p, p)],
                                       dimension_numbers=("NCH", "OIH", "NCH"),
                                       precision=lax.Precision.HIGHEST)
        pre = pre + params[f"conv{i}_b"].reshape(1, CH, 1)
        feats.append(pre)
        if a:
            cur = jnp.where(pre >= 0, pre, NEG_SLOPE * pre)
            feats.append(cur)
        else:
            cur = pre
    return jnp.transpose(cur, (0, 2, 1)), feats


if __name__ == "__main__":
    key = jax.random.PRNGKey(0)
    pkey, xkey = jax.random.split(key)
    params = init_params(pkey)

    B, T = 2, 32                                   # T: 32 -> 16 -> 8 -> 4 -> 2 -> 1 -> 1
    x = jax.random.normal(xkey, (B, T, IN_DIM), jnp.float32)

    fwd = jax.jit(summarizer_forward, static_argnames=("ncl_features",))
    out, feats = fwd(x, params)
    out = jax.block_until_ready(out)
    feats = [jax.block_until_ready(f) for f in feats]

    assert out.shape == (B, 1, CH), out.shape
    assert len(feats) == 12, len(feats)            # 1 linear + 6 convs + 5 leaky relus

    # correctness vs pure-JAX reference (reference conv features are NCL)
    ref_out, ref_feats = reference_forward(x, params)
    assert jnp.allclose(out, ref_out, rtol=1e-3, atol=1e-3)
    assert jnp.allclose(feats[0], ref_feats[0], rtol=1e-3, atol=1e-3)
    for f, rf in zip(feats[1:], ref_feats[1:]):
        assert jnp.allclose(f, jnp.transpose(rf, (0, 2, 1)), rtol=1e-3, atol=1e-3)

    print("KERNEL_OK")
</pallas_src>

<mosaic_0001>
module attributes {stable_mosaic.version = 11 : i64} {
  func.func @_fused_kernel(%arg0: i32, %arg1: memref<2x32x384xf32, #tpu.memory_space<vmem>>, %arg2: memref<384x64xf32, #tpu.memory_space<vmem>>, %arg3: memref<1x64xf32, #tpu.memory_space<vmem>>, %arg4: memref<192x64xf32, #tpu.memory_space<vmem>>, %arg5: memref<1x64xf32, #tpu.memory_space<vmem>>, %arg6: memref<192x64xf32, #tpu.memory_space<vmem>>, %arg7: memref<1x64xf32, #tpu.memory_space<vmem>>, %arg8: memref<192x64xf32, #tpu.memory_space<vmem>>, %arg9: memref<1x64xf32, #tpu.memory_space<vmem>>, %arg10: memref<192x64xf32, #tpu.memory_space<vmem>>, %arg11: memref<1x64xf32, #tpu.memory_space<vmem>>, %arg12: memref<128x64xf32, #tpu.memory_space<vmem>>, %arg13: memref<1x64xf32, #tpu.memory_space<vmem>>, %arg14: memref<64x64xf32, #tpu.memory_space<vmem>>, %arg15: memref<1x64xf32, #tpu.memory_space<vmem>>, %arg16: memref<2x48x128xf32, #tpu.memory_space<vmem>>, %arg17: memref<68x64xf32, #tpu.memory_space<vmem>>, %arg18: memref<36x64xf32, #tpu.memory_space<vmem>>, %arg19: memref<20x64xf32, #tpu.memory_space<vmem>>, %arg20: memref<12x64xf32, #tpu.memory_space<vmem>>, %arg21: memref<4x64xf32, #tpu.memory_space<vmem>>) attributes {dimension_semantics = [#tpu.dimension_semantics<parallel>], iteration_bounds = array<i64: 1>, scalar_prefetch = 0 : i64, scratch_operands = 5 : i64, tpu.core_type = #tpu.core_type<tc>, window_params = [{transform_indices = @transform_0, window_bounds = array<i64: 2, 32, 384>}, {pipeline_mode = #tpu.pipeline_mode<synchronous>, transform_indices = @transform_1, window_bounds = array<i64: 384, 64>}, {pipeline_mode = #tpu.pipeline_mode<synchronous>, transform_indices = @transform_2, window_bounds = array<i64: 1, 64>}, {pipeline_mode = #tpu.pipeline_mode<synchronous>, transform_indices = @transform_3, window_bounds = array<i64: 192, 64>}, {pipeline_mode = #tpu.pipeline_mode<synchronous>, transform_indices = @transform_4, window_bounds = array<i64: 1, 64>}, {pipeline_mode = #tpu.pipeline_mode<synchronous>, transform_indices = @transform_5, window_bounds = array<i64: 192, 64>}, {pipeline_mode = #tpu.pipeline_mode<synchronous>, transform_indices = @transform_6, window_bounds = array<i64: 1, 64>}, {pipeline_mode = #tpu.pipeline_mode<synchronous>, transform_indices = @transform_7, window_bounds = array<i64: 192, 64>}, {pipeline_mode = #tpu.pipeline_mode<synchronous>, transform_indices = @transform_8, window_bounds = array<i64: 1, 64>}, {pipeline_mode = #tpu.pipeline_mode<synchronous>, transform_indices = @transform_9, window_bounds = array<i64: 192, 64>}, {pipeline_mode = #tpu.pipeline_mode<synchronous>, transform_indices = @transform_10, window_bounds = array<i64: 1, 64>}, {pipeline_mode = #tpu.pipeline_mode<synchronous>, transform_indices = @transform_11, window_bounds = array<i64: 128, 64>}, {pipeline_mode = #tpu.pipeline_mode<synchronous>, transform_indices = @transform_12, window_bounds = array<i64: 1, 64>}, {pipeline_mode = #tpu.pipeline_mode<synchronous>, transform_indices = @transform_13, window_bounds = array<i64: 64, 64>}, {pipeline_mode = #tpu.pipeline_mode<synchronous>, transform_indices = @transform_14, window_bounds = array<i64: 1, 64>}, {transform_indices = @transform_15, window_bounds = array<i64: 2, 48, 128>}]} {
    %c0 = arith.constant 0 : index
    %c0_0 = arith.constant 0 : index
    %c0_1 = arith.constant 0 : index
    %0 = vector.load %arg1[%c0, %c0_0, %c0_1] : memref<2x32x384xf32, #tpu.memory_space<vmem>>, vector<2x32x384xf32>
    %1 = vector.shape_cast %0 : vector<2x32x384xf32> to vector<64x384xf32>
    %c0_2 = arith.constant 0 : index
    %c0_3 = arith.constant 0 : index
    %2 = vector.load %arg2[%c0_2, %c0_3] : memref<384x64xf32, #tpu.memory_space<vmem>>, vector<384x64xf32>
    %cst = arith.constant dense<0.000000e+00> : vector<64x64xf32>
    %3 = tpu.matmul %1, %2, %cst {dimension_numbers = #tpu.dot_dimension_numbers<[1], [0], [0], [1], [0, 0, 1, 1], [], []>} : vector<64x384xf32>, vector<384x64xf32>, vector<64x64xf32> -> vector<64x64xf32>
    %c0_4 = arith.constant 0 : index
    %c0_5 = arith.constant 0 : index
    %4 = vector.load %arg3[%c0_4, %c0_5] : memref<1x64xf32, #tpu.memory_space<vmem>>, vector<1x64xf32>
    %5 = vector.broadcast %4 : vector<1x64xf32> to vector<64x64xf32>
    %6 = arith.addf %3, %5 : vector<64x64xf32>
    %7 = vector.extract_strided_slice %6 {offsets = [0, 0], sizes = [32, 64], strides = [1, 1]} : vector<64x64xf32> to vector<32x64xf32>
    %8 = vector.extract_strided_slice %7 {offsets = [0, 0], sizes = [16, 64], strides = [1, 1]} : vector<32x64xf32> to vector<16x64xf32>
    %9 = vector.extract_strided_slice %7 {offsets = [16, 0], sizes = [16, 64], strides = [1, 1]} : vector<32x64xf32> to vector<16x64xf32>
    %10 = tpu.concatenate %8, %9 in 1 : vector<16x64xf32>, vector<16x64xf32> -> vector<16x128xf32>
    %c0_6 = arith.constant 0 : index
    %c0_7 = arith.constant 0 : index
    %c0_8 = arith.constant 0 : index
    %11 = vector.load %arg16[%c0_6, %c0_7, %c0_8] : memref<2x48x128xf32, #tpu.memory_space<vmem>>, vector<1x16x128xf32>
    %12 = vector.shape_cast %11 : vector<1x16x128xf32> to vector<16x128xf32>
    %13 = vector.shape_cast %10 : vector<16x128xf32> to vector<1x16x128xf32>
    tpu.vector_store %arg16[%c0_6, %c0_7, %c0_8], %13 {strides = array<i32>} : memref<2x48x128xf32, #tpu.memory_space<vmem>>, vector<1x16x128xf32>,
    %14 = vector.extract_strided_slice %6 {offsets = [32, 0], sizes = [32, 64], strides = [1, 1]} : vector<64x64xf32> to vector<32x64xf32>
    %15 = vector.extract_strided_slice %14 {offsets = [0, 0], sizes = [16, 64], strides = [1, 1]} : vector<32x64xf32> to vector<16x64xf32>
    %16 = vector.extract_strided_slice %14 {offsets = [16, 0], sizes = [16, 64], strides = [1, 1]} : vector<32x64xf32> to vector<16x64xf32>
    %17 = tpu.concatenate %15, %16 in 1 : vector<16x64xf32>, vector<16x64xf32> -> vector<16x128xf32>
    %c1 = arith.constant 1 : index
    %c0_9 = arith.constant 0 : index
    %c0_10 = arith.constant 0 : index
    %18 = vector.load %arg16[%c1, %c0_9, %c0_10] : memref<2x48x128xf32, #tpu.memory_space<vmem>>, vector<1x16x128xf32>
    %19 = vector.shape_cast %18 : vector<1x16x128xf32> to vector<16x128xf32>
    %20 = vector.shape_cast %17 : vector<16x128xf32> to vector<1x16x128xf32>
    tpu.vector_store %arg16[%c1, %c0_9, %c0_10], %20 {strides = array<i32>} : memref<2x48x128xf32, #tpu.memory_space<vmem>>, vector<1x16x128xf32>,
    %cst_11 = arith.constant 0.000000e+00 : f32
    %21 = vector.broadcast %cst_11 : f32 to vector<1x64xf32>
    %c0_12 = arith.constant 0 : index
    %c0_13 = arith.constant 0 : index
    %22 = vector.load %arg17[%c0_12, %c0_13] : memref<68x64xf32, #tpu.memory_space<vmem>>, vector<1x64xf32>
    tpu.vector_store %arg17[%c0_12, %c0_13], %21 {strides = array<i32>} : memref<68x64xf32, #tpu.memory_space<vmem>>, vector<1x64xf32>,
    %c33 = arith.constant 33 : index
    %c0_14 = arith.constant 0 : index
    %23 = vector.load %arg17[%c33, %c0_14] : memref<68x64xf32, #tpu.memory_space<vmem>>, vector<1x64xf32>
    tpu.vector_store %arg17[%c33, %c0_14], %21 {strides = array<i32>} : memref<68x64xf32, #tpu.memory_space<vmem>>, vector<1x64xf32>,
    %24 = vector.extract_strided_slice %6 {offsets = [0, 0], sizes = [32, 64], strides = [1, 1]} : vector<64x64xf32> to vector<32x64xf32>
    %c1_15 = arith.constant 1 : index
    %c0_16 = arith.constant 0 : index
    %25 = vector.load %arg17[%c1_15, %c0_16] : memref<68x64xf32, #tpu.memory_space<vmem>>, vector<32x64xf32>
    tpu.vector_store %arg17[%c1_15, %c0_16], %24 {strides = array<i32>} : memref<68x64xf32, #tpu.memory_space<vmem>>, vector<32x64xf32>,
    %cst_17 = arith.constant 0.000000e+00 : f32
    %26 = vector.broadcast %cst_17 : f32 to vector<1x64xf32>
    %c34 = arith.constant 34 : index
    %c0_18 = arith.constant 0 : index
    %27 = vector.load %arg17[%c34, %c0_18] : memref<68x64xf32, #tpu.memory_space<vmem>>, vector<1x64xf32>
    tpu.vector_store %arg17[%c34, %c0_18], %26 {strides = array<i32>} : memref<68x64xf32, #tpu.memory_space<vmem>>, vector<1x64xf32>,
    %c67 = arith.constant 67 : index
    %c0_19 = arith.constant 0 : index
    %28 = vector.load %arg17[%c67, %c0_19] : memref<68x64xf32, #tpu.memory_space<vmem>>, vector<1x64xf32>
    tpu.vector_store %arg17[%c67, %c0_19], %26 {strides = array<i32>} : memref<68x64xf32, #tpu.memory_space<vmem>>, vector<1x64xf32>,
    %29 = vector.extract_strided_slice %6 {offsets = [32, 0], sizes = [32, 64], strides = [1, 1]} : vector<64x64xf32> to vector<32x64xf32>
    %c35 = arith.constant 35 : index
    %c0_20 = arith.constant 0 : index
    %30 = vector.load %arg17[%c35, %c0_20] : memref<68x64xf32, #tpu.memory_space<vmem>>, vector<32x64xf32>
    tpu.vector_store %arg17[%c35, %c0_20], %29 {strides = array<i32>} : memref<68x64xf32, #tpu.memory_space<vmem>>, vector<32x64xf32>,
    %c0_21 = arith.constant 0 : index
    %c0_22 = arith.constant 0 : index
    %31 = tpu.strided_load %arg17[%c0_21, %c0_22] {strides = array<i32: 2, 1>} : memref<68x64xf32, #tpu.memory_space<vmem>>, vector<16x64xf32>
    %c1_23 = arith.constant 1 : index
    %c0_24 = arith.constant 0 : index
    %32 = tpu.strided_load %arg17[%c1_23, %c0_24] {strides = array<i32: 2, 1>} : memref<68x64xf32, #tpu.memory_space<vmem>>, vector<16x64xf32>
    %c2 = arith.constant 2 : index
    %c0_25 = arith.constant 0 : index
    %33 = tpu.strided_load %arg17[%c2, %c0_25] {strides = array<i32: 2, 1>} : memref<68x64xf32, #tpu.memory_space<vmem>>, vector<16x64xf32>
    %34 = tpu.concatenate %31, %32, %33 in 1 : vector<16x64xf32>, vector<16x64xf32>, vector<16x64xf32> -> vector<16x192xf32>
    %c34_26 = arith.constant 34 : index
    %c0_27 = arith.constant 0 : index
    %35 = tpu.strided_load %arg17[%c34_26, %c0_27] {strides = array<i32: 2, 1>} : memref<68x64xf32, #tpu.memory_space<vmem>>, vector<16x64xf32>
    %c35_28 = arith.constant 35 : index
    %c0_29 = arith.constant 0 : index
    %36 = tpu.strided_load %arg17[%c35_28, %c0_29] {strides = array<i32: 2, 1>} : memref<68x64xf32, #tpu.memory_space<vmem>>, vector<16x64xf32>
    %c36 = arith.constant 36 : index
    %c0_30 = arith.constant 0 : index
    %37 = tpu.strided_load %arg17[%c36, %c0_30] {strides = array<i32: 2, 1>} : memref<68x64xf32, #tpu.memory_space<vmem>>, vector<16x64xf32>
    %38 = tpu.concatenate %35, %36, %37 in 1 : vector<16x64xf32>, vector<16x64xf32>, vector<16x64xf32> -> vector<16x192xf32>
    %39 = tpu.concatenate %34, %38 in 0 : vector<16x192xf32>, vector<16x192xf32> -> vector<32x192xf32>
    %c0_31 = arith.constant 0 : index
    %c0_32 = arith.constant 0 : index
    %40 = vector.load %arg4[%c0_31, %c0_32] : memref<192x64xf32, #tpu.memory_space<vmem>>, vector<192x64xf32>
    %cst_33 = arith.constant dense<0.000000e+00> : vector<32x64xf32>
    %41 = tpu.matmul %39, %40, %cst_33 {dimension_numbers = #tpu.dot_dimension_numbers<[1], [0], [0], [1], [0, 0, 1, 1], [], []>} : vector<32x192xf32>, vector<192x64xf32>, vector<32x64xf32> -> vector<32x64xf32>
    %c0_34 = arith.constant 0 : index
    %c0_35 = arith.constant 0 : index
    %42 = vector.load %arg5[%c0_34, %c0_35] : memref<1x64xf32, #tpu.memory_space<vmem>>, vector<1x64xf32>
    %43 = vector.broadcast %42 : vector<1x64xf32> to vector<32x64xf32>
    %44 = arith.addf %41, %43 : vector<32x64xf32>
    %cst_36 = arith.constant 0.000000e+00 : f32
    %45 = vector.broadcast %cst_36 : f32 to vector<32x64xf32>
    %46 = arith.cmpf oge, %44, %45 : vector<32x64xf32>
    %cst_37 = arith.constant 2.000000e-01 : f32
    %47 = vector.broadcast %cst_37 : f32 to vector<32x64xf32>
    %48 = arith.mulf %47, %44 : vector<32x64xf32>
    %49 = arith.select %46, %44, %48 : vector<32x64xi1>, vector<32x64xf32>
    %50 = vector.extract_strided_slice %44 {offsets = [0, 0], sizes = [16, 64], strides = [1, 1]} : vector<32x64xf32> to vector<16x64xf32>
    %51 = vector.extract_strided_slice %49 {offsets = [0, 0], sizes = [16, 64], strides = [1, 1]} : vector<32x64xf32> to vector<16x64xf32>
    %52 = tpu.concatenate %50, %51 in 1 : vector<16x64xf32>, vector<16x64xf32> -> vector<16x128xf32>
    %c0_38 = arith.constant 0 : index
    %c16 = arith.constant 16 : index
    %c0_39 = arith.constant 0 : index
    %53 = vector.load %arg16[%c0_38, %c16, %c0_39] : memref<2x48x128xf32, #tpu.memory_space<vmem>>, vector<1x16x128xf32>
    %54 = vector.shape_cast %53 : vector<1x16x128xf32> to vector<16x128xf32>
    %55 = vector.shape_cast %52 : vector<16x128xf32> to vector<1x16x128xf32>
    tpu.vector_store %arg16[%c0_38, %c16, %c0_39], %55 {strides = array<i32>} : memref<2x48x128xf32, #tpu.memory_space<vmem>>, vector<1x16x128xf32>,
    %56 = vector.extract_strided_slice %44 {offsets = [16, 0], sizes = [16, 64], strides = [1, 1]} : vector<32x64xf32> to vector<16x64xf32>
    %57 = vector.extract_strided_slice %49 {offsets = [16, 0], sizes = [16, 64], strides = [1, 1]} : vector<32x64xf32> to vector<16x64xf32>
    %58 = tpu.concatenate %56, %57 in 1 : vector<16x64xf32>, vector<16x64xf32> -> vector<16x128xf32>
    %c1_40 = arith.constant 1 : index
    %c16_41 = arith.constant 16 : index
    %c0_42 = arith.constant 0 : index
    %59 = vector.load %arg16[%c1_40, %c16_41, %c0_42] : memref<2x48x128xf32, #tpu.memory_space<vmem>>, vector<1x16x128xf32>
    %60 = vector.shape_cast %59 : vector<1x16x128xf32> to vector<16x128xf32>
    %61 = vector.shape_cast %58 : vector<16x128xf32> to vector<1x16x128xf32>
    tpu.vector_store %arg16[%c1_40, %c16_41, %c0_42], %61 {strides = array<i32>} : memref<2x48x128xf32, #tpu.memory_space<vmem>>, vector<1x16x128xf32>,
    %cst_43 = arith.constant 0.000000e+00 : f32
    %62 = vector.broadcast %cst_43 : f32 to vector<1x64xf32>
    %c0_44 = arith.constant 0 : index
    %c0_45 = arith.constant 0 : index
    %63 = vector.load %arg18[%c0_44, %c0_45] : memref<36x64xf32, #tpu.memory_space<vmem>>, vector<1x64xf32>
    tpu.vector_store %arg18[%c0_44, %c0_45], %62 {strides = array<i32>} : memref<36x64xf32, #tpu.memory_space<vmem>>, vector<1x64xf32>,
    %c17 = arith.constant 17 : index
    %c0_46 = arith.constant 0 : index
    %64 = vector.load %arg18[%c17, %c0_46] : memref<36x64xf32, #tpu.memory_space<vmem>>, vector<1x64xf32>
    tpu.vector_store %arg18[%c17, %c0_46], %62 {strides = array<i32>} : memref<36x64xf32, #tpu.memory_space<vmem>>, vector<1x64xf32>,
    %65 = vector.extract_strided_slice %49 {offsets = [0, 0], sizes = [16, 64], strides = [1, 1]} : vector<32x64xf32> to vector<16x64xf32>
    %c1_47 = arith.constant 1 : index
    %c0_48 = arith.constant 0 : index
    %66 = vector.load %arg18[%c1_47, %c0_48] : memref<36x64xf32, #tpu.memory_space<vmem>>, vector<16x64xf32>
    tpu.vector_store %arg18[%c1_47, %c0_48], %65 {strides = array<i32>} : memref<36x64xf32, #tpu.memory_space<vmem>>, vector<16x64xf32>,
    %cst_49 = arith.constant 0.000000e+00 : f32
    %67 = vector.broadcast %cst_49 : f32 to vector<1x64xf32>
    %c18 = arith.constant 18 : index
    %c0_50 = arith.constant 0 : index
    %68 = vector.load %arg18[%c18, %c0_50] : memref<36x64xf32, #tpu.memory_space<vmem>>, vector<1x64xf32>
    tpu.vector_store %arg18[%c18, %c0_50], %67 {strides = array<i32>} : memref<36x64xf32, #tpu.memory_space<vmem>>, vector<1x64xf32>,
    %c35_51 = arith.constant 35 : index
    %c0_52 = arith.constant 0 : index
    %69 = vector.load %arg18[%c35_51, %c0_52] : memref<36x64xf32, #tpu.memory_space<vmem>>, vector<1x64xf32>
    tpu.vector_store %arg18[%c35_51, %c0_52], %67 {strides = array<i32>} : memref<36x64xf32, #tpu.memory_space<vmem>>, vector<1x64xf32>,
    %70 = vector.extract_strided_slice %49 {offsets = [16, 0], sizes = [16, 64], strides = [1, 1]} : vector<32x64xf32> to vector<16x64xf32>
    %c19 = arith.constant 19 : index
    %c0_53 = arith.constant 0 : index
    %71 = vector.load %arg18[%c19, %c0_53] : memref<36x64xf32, #tpu.memory_space<vmem>>, vector<16x64xf32>
    tpu.vector_store %arg18[%c19, %c0_53], %70 {strides = array<i32>} : memref<36x64xf32, #tpu.memory_space<vmem>>, vector<16x64xf32>,
    %c0_54 = arith.constant 0 : index
    %c0_55 = arith.constant 0 : index
    %72 = tpu.strided_load %arg18[%c0_54, %c0_55] {strides = array<i32: 2, 1>} : memref<36x64xf32, #tpu.memory_space<vmem>>, vector<8x64xf32>
    %c1_56 = arith.constant 1 : index
    %c0_57 = arith.constant 0 : index
    %73 = tpu.strided_load %arg18[%c1_56, %c0_57] {strides = array<i32: 2, 1>} : memref<36x64xf32, #tpu.memory_space<vmem>>, vector<8x64xf32>
    %c2_58 = arith.constant 2 : index
    %c0_59 = arith.constant 0 : index
    %74 = tpu.strided_load %arg18[%c2_58, %c0_59] {strides = array<i32: 2, 1>} : memref<36x64xf32, #tpu.memory_space<vmem>>, vector<8x64xf32>
    %75 = tpu.concatenate %72, %73, %74 in 1 : vector<8x64xf32>, vector<8x64xf32>, vector<8x64xf32> -> vector<8x192xf32>
    %c18_60 = arith.constant 18 : index
    %c0_61 = arith.constant 0 : index
    %76 = tpu.strided_load %arg18[%c18_60, %c0_61] {strides = array<i32: 2, 1>} : memref<36x64xf32, #tpu.memory_space<vmem>>, vector<8x64xf32>
    %c19_62 = arith.constant 19 : index
    %c0_63 = arith.constant 0 : index
    %77 = tpu.strided_load %arg18[%c19_62, %c0_63] {strides = array<i32: 2, 1>} : memref<36x64xf32, #tpu.memory_space<vmem>>, vector<8x64xf32>
    %c20 = arith.constant 20 : index
    %c0_64 = arith.constant 0 : index
    %78 = tpu.strided_load %arg18[%c20, %c0_64] {strides = array<i32: 2, 1>} : memref<36x64xf32, #tpu.memory_space<vmem>>, vector<8x64xf32>
    %79 = tpu.concatenate %76, %77, %78 in 1 : vector<8x64xf32>, vector<8x64xf32>, vector<8x64xf32> -> vector<8x192xf32>
    %80 = tpu.concatenate %75, %79 in 0 : vector<8x192xf32>, vector<8x192xf32> -> vector<16x192xf32>
    %c0_65 = arith.constant 0 : index
    %c0_66 = arith.constant 0 : index
    %81 = vector.load %arg6[%c0_65, %c0_66] : memref<192x64xf32, #tpu.memory_space<vmem>>, vector<192x64xf32>
    %cst_67 = arith.constant dense<0.000000e+00> : vector<16x64xf32>
    %82 = tpu.matmul %80, %81, %cst_67 {dimension_numbers = #tpu.dot_dimension_numbers<[1], [0], [0], [1], [0, 0, 1, 1], [], []>} : vector<16x192xf32>, vector<192x64xf32>, vector<16x64xf32> -> vector<16x64xf32>
    %c0_68 = arith.constant 0 : index
    %c0_69 = arith.constant 0 : index
    %83 = vector.load %arg7[%c0_68, %c0_69] : memref<1x64xf32, #tpu.memory_space<vmem>>, vector<1x64xf32>
    %84 = vector.broadcast %83 : vector<1x64xf32> to vector<16x64xf32>
    %85 = arith.addf %82, %84 : vector<16x64xf32>
    %cst_70 = arith.constant 0.000000e+00 : f32
    %86 = vector.broadcast %cst_70 : f32 to vector<16x64xf32>
    %87 = arith.cmpf oge, %85, %86 : vector<16x64xf32>
    %cst_71 = arith.constant 2.000000e-01 : f32
    %88 = vector.broadcast %cst_71 : f32 to vector<16x64xf32>
    %89 = arith.mulf %88, %85 : vector<16x64xf32>
    %90 = arith.select %87, %85, %89 : vector<16x64xi1>, vector<16x64xf32>
    %91 = vector.extract_strided_slice %85 {offsets = [0, 0], sizes = [8, 64], strides = [1, 1]} : vector<16x64xf32> to vector<8x64xf32>
    %92 = vector.extract_strided_slice %90 {offsets = [0, 0], sizes = [8, 64], strides = [1, 1]} : vector<16x64xf32> to vector<8x64xf32>
    %93 = tpu.concatenate %91, %92 in 1 : vector<8x64xf32>, vector<8x64xf32> -> vector<8x128xf32>
    %c0_72 = arith.constant 0 : index
    %c32 = arith.constant 32 : index
    %c0_73 = arith.constant 0 : index
    %94 = vector.load %arg16[%c0_72, %c32, %c0_73] : memref<2x48x128xf32, #tpu.memory_space<vmem>>, vector<1x8x128xf32>
    %95 = vector.shape_cast %94 : vector<1x8x128xf32> to vector<8x128xf32>
    %96 = vector.shape_cast %93 : vector<8x128xf32> to vector<1x8x128xf32>
    tpu.vector_store %arg16[%c0_72, %c32, %c0_73], %96 {strides = array<i32>} : memref<2x48x128xf32, #tpu.memory_space<vmem>>, vector<1x8x128xf32>,
    %97 = vector.extract_strided_slice %85 {offsets = [8, 0], sizes = [8, 64], strides = [1, 1]} : vector<16x64xf32> to vector<8x64xf32>
    %98 = vector.extract_strided_slice %90 {offsets = [8, 0], sizes = [8, 64], strides = [1, 1]} : vector<16x64xf32> to vector<8x64xf32>
    %99 = tpu.concatenate %97, %98 in 1 : vector<8x64xf32>, vector<8x64xf32> -> vector<8x128xf32>
    %c1_74 = arith.constant 1 : index
    %c32_75 = arith.constant 32 : index
    %c0_76 = arith.constant 0 : index
    %100 = vector.load %arg16[%c1_74, %c32_75, %c0_76] : memref<2x48x128xf32, #tpu.memory_space<vmem>>, vector<1x8x128xf32>
    %101 = vector.shape_cast %100 : vector<1x8x128xf32> to vector<8x128xf32>
    %102 = vector.shape_cast %99 : vector<8x128xf32> to vector<1x8x128xf32>
    tpu.vector_store %arg16[%c1_74, %c32_75, %c0_76], %102 {strides = array<i32>} : memref<2x48x128xf32, #tpu.memory_space<vmem>>, vector<1x8x128xf32>,
    %cst_77 = arith.constant 0.000000e+00 : f32
    %103 = vector.broadcast %cst_77 : f32 to vector<1x64xf32>
    %c0_78 = arith.constant 0 : index
    %c0_79 = arith.constant 0 : index
    %104 = vector.load %arg19[%c0_78, %c0_79] : memref<20x64xf32, #tpu.memory_space<vmem>>, vector<1x64xf32>
    tpu.vector_store %arg19[%c0_78, %c0_79], %103 {strides = array<i32>} : memref<20x64xf32, #tpu.memory_space<vmem>>, vector<1x64xf32>,
    %c9 = arith.constant 9 : index
    %c0_80 = arith.constant 0 : index
    %105 = vector.load %arg19[%c9, %c0_80] : memref<20x64xf32, #tpu.memory_space<vmem>>, vector<1x64xf32>
    tpu.vector_store %arg19[%c9, %c0_80], %103 {strides = array<i32>} : memref<20x64xf32, #tpu.memory_space<vmem>>, vector<1x64xf32>,
    %106 = vector.extract_strided_slice %90 {offsets = [0, 0], sizes = [8, 64], strides = [1, 1]} : vector<16x64xf32> to vector<8x64xf32>
    %c1_81 = arith.constant 1 : index
    %c0_82 = arith.constant 0 : index
    %107 = vector.load %arg19[%c1_81, %c0_82] : memref<20x64xf32, #tpu.memory_space<vmem>>, vector<8x64xf32>
    tpu.vector_store %arg19[%c1_81, %c0_82], %106 {strides = array<i32>} : memref<20x64xf32, #tpu.memory_space<vmem>>, vector<8x64xf32>,
    %cst_83 = arith.constant 0.000000e+00 : f32
    %108 = vector.broadcast %cst_83 : f32 to vector<1x64xf32>
    %c10 = arith.constant 10 : index
    %c0_84 = arith.constant 0 : index
    %109 = vector.load %arg19[%c10, %c0_84] : memref<20x64xf32, #tpu.memory_space<vmem>>, vector<1x64xf32>
    tpu.vector_store %arg19[%c10, %c0_84], %108 {strides = array<i32>} : memref<20x64xf32, #tpu.memory_space<vmem>>, vector<1x64xf32>,
    %c19_85 = arith.constant 19 : index
    %c0_86 = arith.constant 0 : index
    %110 = vector.load %arg19[%c19_85, %c0_86] : memref<20x64xf32, #tpu.memory_space<vmem>>, vector<1x64xf32>
    tpu.vector_store %arg19[%c19_85, %c0_86], %108 {strides = array<i32>} : memref<20x64xf32, #tpu.memory_space<vmem>>, vector<1x64xf32>,
    %111 = vector.extract_strided_slice %90 {offsets = [8, 0], sizes = [8, 64], strides = [1, 1]} : vector<16x64xf32> to vector<8x64xf32>
    %c11 = arith.constant 11 : index
    %c0_87 = arith.constant 0 : index
    %112 = vector.load %arg19[%c11, %c0_87] : memref<20x64xf32, #tpu.memory_space<vmem>>, vector<8x64xf32>
    tpu.vector_store %arg19[%c11, %c0_87], %111 {strides = array<i32>} : memref<20x64xf32, #tpu.memory_space<vmem>>, vector<8x64xf32>,
    %c0_88 = arith.constant 0 : index
    %c0_89 = arith.constant 0 : index
    %113 = tpu.strided_load %arg19[%c0_88, %c0_89] {strides = array<i32: 2, 1>} : memref<20x64xf32, #tpu.memory_space<vmem>>, vector<4x64xf32>
    %c1_90 = arith.constant 1 : index
    %c0_91 = arith.constant 0 : index
    %114 = tpu.strided_load %arg19[%c1_90, %c0_91] {strides = array<i32: 2, 1>} : memref<20x64xf32, #tpu.memory_space<vmem>>, vector<4x64xf32>
    %c2_92 = arith.constant 2 : index
    %c0_93 = arith.constant 0 : index
    %115 = tpu.strided_load %arg19[%c2_92, %c0_93] {strides = array<i32: 2, 1>} : memref<20x64xf32, #tpu.memory_space<vmem>>, vector<4x64xf32>
    %116 = tpu.concatenate %113, %114, %115 in 1 : vector<4x64xf32>, vector<4x64xf32>, vector<4x64xf32> -> vector<4x192xf32>
    %c10_94 = arith.constant 10 : index
    %c0_95 = arith.constant 0 : index
    %117 = tpu.strided_load %arg19[%c10_94, %c0_95] {strides = array<i32: 2, 1>} : memref<20x64xf32, #tpu.memory_space<vmem>>, vector<4x64xf32>
    %c11_96 = arith.constant 11 : index
    %c0_97 = arith.constant 0 : index
    %118 = tpu.strided_load %arg19[%c11_96, %c0_97] {strides = array<i32: 2, 1>} : memref<20x64xf32, #tpu.memory_space<vmem>>, vector<4x64xf32>
    %c12 = arith.constant 12 : index
    %c0_98 = arith.constant 0 : index
    %119 = tpu.strided_load %arg19[%c12, %c0_98] {strides = array<i32: 2, 1>} : memref<20x64xf32, #tpu.memory_space<vmem>>, vector<4x64xf32>
    %120 = tpu.concatenate %117, %118, %119 in 1 : vector<4x64xf32>, vector<4x64xf32>, vector<4x64xf32> -> vector<4x192xf32>
    %121 = tpu.concatenate %116, %120 in 0 : vector<4x192xf32>, vector<4x192xf32> -> vector<8x192xf32>
    %c0_99 = arith.constant 0 : index
    %c0_100 = arith.constant 0 : index
    %122 = vector.load %arg8[%c0_99, %c0_100] : memref<192x64xf32, #tpu.memory_space<vmem>>, vector<192x64xf32>
    %cst_101 = arith.constant dense<0.000000e+00> : vector<8x64xf32>
    %123 = tpu.matmul %121, %122, %cst_101 {dimension_numbers = #tpu.dot_dimension_numbers<[1], [0], [0], [1], [0, 0, 1, 1], [], []>} : vector<8x192xf32>, vector<192x64xf32>, vector<8x64xf32> -> vector<8x64xf32>
    %c0_102 = arith.constant 0 : index
    %c0_103 = arith.constant 0 : index
    %124 = vector.load %arg9[%c0_102, %c0_103] : memref<1x64xf32, #tpu.memory_space<vmem>>, vector<1x64xf32>
    %125 = vector.broadcast %124 : vector<1x64xf32> to vector<8x64xf32>
    %126 = arith.addf %123, %125 : vector<8x64xf32>
    %cst_104 = arith.constant 0.000000e+00 : f32
    %127 = vector.broadcast %cst_104 : f32 to vector<8x64xf32>
    %128 = arith.cmpf oge, %126, %127 : vector<8x64xf32>
    %cst_105 = arith.constant 2.000000e-01 : f32
    %129 = vector.broadcast %cst_105 : f32 to vector<8x64xf32>
    %130 = arith.mulf %129, %126 : vector<8x64xf32>
    %131 = arith.select %128, %126, %130 : vector<8x64xi1>, vector<8x64xf32>
    %132 = vector.extract_strided_slice %126 {offsets = [0, 0], sizes = [4, 64], strides = [1, 1]} : vector<8x64xf32> to vector<4x64xf32>
    %133 = vector.extract_strided_slice %131 {offsets = [0, 0], sizes = [4, 64], strides = [1, 1]} : vector<8x64xf32> to vector<4x64xf32>
    %134 = tpu.concatenate %132, %133 in 1 : vector<4x64xf32>, vector<4x64xf32> -> vector<4x128xf32>
    %c0_106 = arith.constant 0 : index
    %c40 = arith.constant 40 : index
    %c0_107 = arith.constant 0 : index
    %135 = vector.load %arg16[%c0_106, %c40, %c0_107] : memref<2x48x128xf32, #tpu.memory_space<vmem>>, vector<1x4x128xf32>
    %136 = vector.shape_cast %135 : vector<1x4x128xf32> to vector<4x128xf32>
    %137 = vector.shape_cast %134 : vector<4x128xf32> to vector<1x4x128xf32>
    tpu.vector_store %arg16[%c0_106, %c40, %c0_107], %137 {strides = array<i32>} : memref<2x48x128xf32, #tpu.memory_space<vmem>>, vector<1x4x128xf32>,
    %138 = vector.extract_strided_slice %126 {offsets = [4, 0], sizes = [4, 64], strides = [1, 1]} : vector<8x64xf32> to vector<4x64xf32>
    %139 = vector.extract_strided_slice %131 {offsets = [4, 0], sizes = [4, 64], strides = [1, 1]} : vector<8x64xf32> to vector<4x64xf32>
    %140 = tpu.concatenate %138, %139 in 1 : vector<4x64xf32>, vector<4x64xf32> -> vector<4x128xf32>
    %c1_108 = arith.constant 1 : index
    %c40_109 = arith.constant 40 : index
    %c0_110 = arith.constant 0 : index
    %141 = vector.load %arg16[%c1_108, %c40_109, %c0_110] : memref<2x48x128xf32, #tpu.memory_space<vmem>>, vector<1x4x128xf32>
    %142 = vector.shape_cast %141 : vector<1x4x128xf32> to vector<4x128xf32>
    %143 = vector.shape_cast %140 : vector<4x128xf32> to vector<1x4x128xf32>
    tpu.vector_store %arg16[%c1_108, %c40_109, %c0_110], %143 {strides = array<i32>} : memref<2x48x128xf32, #tpu.memory_space<vmem>>, vector<1x4x128xf32>,
    %cst_111 = arith.constant 0.000000e+00 : f32
    %144 = vector.broadcast %cst_111 : f32 to vector<1x64xf32>
    %c0_112 = arith.constant 0 : index
    %c0_113 = arith.constant 0 : index
    %145 = vector.load %arg20[%c0_112, %c0_113] : memref<12x64xf32, #tpu.memory_space<vmem>>, vector<1x64xf32>
    tpu.vector_store %arg20[%c0_112, %c0_113], %144 {strides = array<i32>} : memref<12x64xf32, #tpu.memory_space<vmem>>, vector<1x64xf32>,
    %c5 = arith.constant 5 : index
    %c0_114 = arith.constant 0 : index
    %146 = vector.load %arg20[%c5, %c0_114] : memref<12x64xf32, #tpu.memory_space<vmem>>, vector<1x64xf32>
    tpu.vector_store %arg20[%c5, %c0_114], %144 {strides = array<i32>} : memref<12x64xf32, #tpu.memory_space<vmem>>, vector<1x64xf32>,
    %147 = vector.extract_strided_slice %131 {offsets = [0, 0], sizes = [4, 64], strides = [1, 1]} : vector<8x64xf32> to vector<4x64xf32>
    %c1_115 = arith.constant 1 : index
    %c0_116 = arith.constant 0 : index
    %148 = vector.load %arg20[%c1_115, %c0_116] : memref<12x64xf32, #tpu.memory_space<vmem>>, vector<4x64xf32>
    tpu.vector_store %arg20[%c1_115, %c0_116], %147 {strides = array<i32>} : memref<12x64xf32, #tpu.memory_space<vmem>>, vector<4x64xf32>,
    %cst_117 = arith.constant 0.000000e+00 : f32
    %149 = vector.broadcast %cst_117 : f32 to vector<1x64xf32>
    %c6 = arith.constant 6 : index
    %c0_118 = arith.constant 0 : index
    %150 = vector.load %arg20[%c6, %c0_118] : memref<12x64xf32, #tpu.memory_space<vmem>>, vector<1x64xf32>
    tpu.vector_store %arg20[%c6, %c0_118], %149 {strides = array<i32>} : memref<12x64xf32, #tpu.memory_space<vmem>>, vector<1x64xf32>,
    %c11_119 = arith.constant 11 : index
    %c0_120 = arith.constant 0 : index
    %151 = vector.load %arg20[%c11_119, %c0_120] : memref<12x64xf32, #tpu.memory_space<vmem>>, vector<1x64xf32>
    tpu.vector_store %arg20[%c11_119, %c0_120], %149 {strides = array<i32>} : memref<12x64xf32, #tpu.memory_space<vmem>>, vector<1x64xf32>,
    %152 = vector.extract_strided_slice %131 {offsets = [4, 0], sizes = [4, 64], strides = [1, 1]} : vector<8x64xf32> to vector<4x64xf32>
    %c7 = arith.constant 7 : index
    %c0_121 = arith.constant 0 : index
    %153 = vector.load %arg20[%c7, %c0_121] : memref<12x64xf32, #tpu.memory_space<vmem>>, vector<4x64xf32>
    tpu.vector_store %arg20[%c7, %c0_121], %152 {strides = array<i32>} : memref<12x64xf32, #tpu.memory_space<vmem>>, vector<4x64xf32>,
    %c0_122 = arith.constant 0 : index
    %c0_123 = arith.constant 0 : index
    %154 = tpu.strided_load %arg20[%c0_122, %c0_123] {strides = array<i32: 2, 1>} : memref<12x64xf32, #tpu.memory_space<vmem>>, vector<2x64xf32>
    %c1_124 = arith.constant 1 : index
    %c0_125 = arith.constant 0 : index
    %155 = tpu.strided_load %arg20[%c1_124, %c0_125] {strides = array<i32: 2, 1>} : memref<12x64xf32, #tpu.memory_space<vmem>>, vector<2x64xf32>
    %c2_126 = arith.constant 2 : index
    %c0_127 = arith.constant 0 : index
    %156 = tpu.strided_load %arg20[%c2_126, %c0_127] {strides = array<i32: 2, 1>} : memref<12x64xf32, #tpu.memory_space<vmem>>, vector<2x64xf32>
    %157 = tpu.concatenate %154, %155, %156 in 1 : vector<2x64xf32>, vector<2x64xf32>, vector<2x64xf32> -> vector<2x192xf32>
    %c6_128 = arith.constant 6 : index
    %c0_129 = arith.constant 0 : index
    %158 = tpu.strided_load %arg20[%c6_128, %c0_129] {strides = array<i32: 2, 1>} : memref<12x64xf32, #tpu.memory_space<vmem>>, vector<2x64xf32>
    %c7_130 = arith.constant 7 : index
    %c0_131 = arith.constant 0 : index
    %159 = tpu.strided_load %arg20[%c7_130, %c0_131] {strides = array<i32: 2, 1>} : memref<12x64xf32, #tpu.memory_space<vmem>>, vector<2x64xf32>
    %c8 = arith.constant 8 : index
    %c0_132 = arith.constant 0 : index
    %160 = tpu.strided_load %arg20[%c8, %c0_132] {strides = array<i32: 2, 1>} : memref<12x64xf32, #tpu.memory_space<vmem>>, vector<2x64xf32>
    %161 = tpu.concatenate %158, %159, %160 in 1 : vector<2x64xf32>, vector<2x64xf32>, vector<2x64xf32> -> vector<2x192xf32>
    %162 = tpu.concatenate %157, %161 in 0 : vector<2x192xf32>, vector<2x192xf32> -> vector<4x192xf32>
    %c0_133 = arith.constant 0 : index
    %c0_134 = arith.constant 0 : index
    %163 = vector.load %arg10[%c0_133, %c0_134] : memref<192x64xf32, #tpu.memory_space<vmem>>, vector<192x64xf32>
    %cst_135 = arith.constant dense<0.000000e+00> : vector<4x64xf32>
    %164 = tpu.matmul %162, %163, %cst_135 {dimension_numbers = #tpu.dot_dimension_numbers<[1], [0], [0], [1], [0, 0, 1, 1], [], []>} : vector<4x192xf32>, vector<192x64xf32>, vector<4x64xf32> -> vector<4x64xf32>
    %c0_136 = arith.constant 0 : index
    %c0_137 = arith.constant 0 : index
    %165 = vector.load %arg11[%c0_136, %c0_137] : memref<1x64xf32, #tpu.memory_space<vmem>>, vector<1x64xf32>
    %166 = vector.broadcast %165 : vector<1x64xf32> to vector<4x64xf32>
    %167 = arith.addf %164, %166 : vector<4x64xf32>
    %cst_138 = arith.constant 0.000000e+00 : f32
    %168 = vector.broadcast %cst_138 : f32 to vector<4x64xf32>
    %169 = arith.cmpf oge, %167, %168 : vector<4x64xf32>
    %cst_139 = arith.constant 2.000000e-01 : f32
    %170 = vector.broadcast %cst_139 : f32 to vector<4x64xf32>
    %171 = arith.mulf %170, %167 : vector<4x64xf32>
    %172 = arith.select %169, %167, %171 : vector<4x64xi1>, vector<4x64xf32>
    %173 = vector.extract_strided_slice %167 {offsets = [0, 0], sizes = [2, 64], strides = [1, 1]} : vector<4x64xf32> to vector<2x64xf32>
    %174 = vector.extract_strided_slice %172 {offsets = [0, 0], sizes = [2, 64], strides = [1, 1]} : vector<4x64xf32> to vector<2x64xf32>
    %175 = tpu.concatenate %173, %174 in 1 : vector<2x64xf32>, vector<2x64xf32> -> vector<2x128xf32>
    %c0_140 = arith.constant 0 : index
    %c44 = arith.constant 44 : index
    %c0_141 = arith.constant 0 : index
    %176 = vector.load %arg16[%c0_140, %c44, %c0_141] : memref<2x48x128xf32, #tpu.memory_space<vmem>>, vector<1x2x128xf32>
    %177 = vector.shape_cast %176 : vector<1x2x128xf32> to vector<2x128xf32>
    %178 = vector.shape_cast %175 : vector<2x128xf32> to vector<1x2x128xf32>
    tpu.vector_store %arg16[%c0_140, %c44, %c0_141], %178 {strides = array<i32>} : memref<2x48x128xf32, #tpu.memory_space<vmem>>, vector<1x2x128xf32>,
    %179 = vector.extract_strided_slice %167 {offsets = [2, 0], sizes = [2, 64], strides = [1, 1]} : vector<4x64xf32> to vector<2x64xf32>
    %180 = vector.extract_strided_slice %172 {offsets = [2, 0], sizes = [2, 64], strides = [1, 1]} : vector<4x64xf32> to vector<2x64xf32>
    %181 = tpu.concatenate %179, %180 in 1 : vector<2x64xf32>, vector<2x64xf32> -> vector<2x128xf32>
    %c1_142 = arith.constant 1 : index
    %c44_143 = arith.constant 44 : index
    %c0_144 = arith.constant 0 : index
    %182 = vector.load %arg16[%c1_142, %c44_143, %c0_144] : memref<2x48x128xf32, #tpu.memory_space<vmem>>, vector<1x2x128xf32>
    %183 = vector.shape_cast %182 : vector<1x2x128xf32> to vector<2x128xf32>
    %184 = vector.shape_cast %181 : vector<2x128xf32> to vector<1x2x128xf32>
    tpu.vector_store %arg16[%c1_142, %c44_143, %c0_144], %184 {strides = array<i32>} : memref<2x48x128xf32, #tpu.memory_space<vmem>>, vector<1x2x128xf32>,
    %185 = vector.extract_strided_slice %172 {offsets = [0, 0], sizes = [2, 64], strides = [1, 1]} : vector<4x64xf32> to vector<2x64xf32>
    %c0_145 = arith.constant 0 : index
    %c0_146 = arith.constant 0 : index
    %186 = vector.load %arg21[%c0_145, %c0_146] : memref<4x64xf32, #tpu.memory_space<vmem>>, vector<2x64xf32>
    tpu.vector_store %arg21[%c0_145, %c0_146], %185 {strides = array<i32>} : memref<4x64xf32, #tpu.memory_space<vmem>>, vector<2x64xf32>,
    %187 = vector.extract_strided_slice %172 {offsets = [2, 0], sizes = [2, 64], strides = [1, 1]} : vector<4x64xf32> to vector<2x64xf32>
    %c2_147 = arith.constant 2 : index
    %c0_148 = arith.constant 0 : index
    %188 = vector.load %arg21[%c2_147, %c0_148] : memref<4x64xf32, #tpu.memory_space<vmem>>, vector<2x64xf32>
    tpu.vector_store %arg21[%c2_147, %c0_148], %187 {strides = array<i32>} : memref<4x64xf32, #tpu.memory_space<vmem>>, vector<2x64xf32>,
    %c0_149 = arith.constant 0 : index
    %c0_150 = arith.constant 0 : index
    %189 = tpu.strided_load %arg21[%c0_149, %c0_150] {strides = array<i32: 2, 1>} : memref<4x64xf32, #tpu.memory_space<vmem>>, vector<1x64xf32>
    %c1_151 = arith.constant 1 : index
    %c0_152 = arith.constant 0 : index
    %190 = tpu.strided_load %arg21[%c1_151, %c0_152] {strides = array<i32: 2, 1>} : memref<4x64xf32, #tpu.memory_space<vmem>>, vector<1x64xf32>
    %191 = tpu.concatenate %189, %190 in 1 : vector<1x64xf32>, vector<1x64xf32> -> vector<1x128xf32>
    %c2_153 = arith.constant 2 : index
    %c0_154 = arith.constant 0 : index
    %192 = tpu.strided_load %arg21[%c2_153, %c0_154] {strides = array<i32: 2, 1>} : memref<4x64xf32, #tpu.memory_space<vmem>>, vector<1x64xf32>
    %c3 = arith.constant 3 : index
    %c0_155 = arith.constant 0 : index
    %193 = tpu.strided_load %arg21[%c3, %c0_155] {strides = array<i32: 2, 1>} : memref<4x64xf32, #tpu.memory_space<vmem>>, vector<1x64xf32>
    %194 = tpu.concatenate %192, %193 in 1 : vector<1x64xf32>, vector<1x64xf32> -> vector<1x128xf32>
    %195 = tpu.concatenate %191, %194 in 0 : vector<1x128xf32>, vector<1x128xf32> -> vector<2x128xf32>
    %c0_156 = arith.constant 0 : index
    %c0_157 = arith.constant 0 : index
    %196 = vector.load %arg12[%c0_156, %c0_157] : memref<128x64xf32, #tpu.memory_space<vmem>>, vector<128x64xf32>
    %cst_158 = arith.constant dense<0.000000e+00> : vector<2x64xf32>
    %197 = tpu.matmul %195, %196, %cst_158 {dimension_numbers = #tpu.dot_dimension_numbers<[1], [0], [0], [1], [0, 0, 1, 1], [], []>} : vector<2x128xf32>, vector<128x64xf32>, vector<2x64xf32> -> vector<2x64xf32>
    %c0_159 = arith.constant 0 : index
    %c0_160 = arith.constant 0 : index
    %198 = vector.load %arg13[%c0_159, %c0_160] : memref<1x64xf32, #tpu.memory_space<vmem>>, vector<1x64xf32>
    %199 = vector.broadcast %198 : vector<1x64xf32> to vector<2x64xf32>
    %200 = arith.addf %197, %199 : vector<2x64xf32>
    %cst_161 = arith.constant 0.000000e+00 : f32
    %201 = vector.broadcast %cst_161 : f32 to vector<2x64xf32>
    %202 = arith.cmpf oge, %200, %201 : vector<2x64xf32>
    %cst_162 = arith.constant 2.000000e-01 : f32
    %203 = vector.broadcast %cst_162 : f32 to vector<2x64xf32>
    %204 = arith.mulf %203, %200 : vector<2x64xf32>
    %205 = arith.select %202, %200, %204 : vector<2x64xi1>, vector<2x64xf32>
    %206 = vector.extract_strided_slice %200 {offsets = [0, 0], sizes = [1, 64], strides = [1, 1]} : vector<2x64xf32> to vector<1x64xf32>
    %207 = vector.extract_strided_slice %205 {offsets = [0, 0], sizes = [1, 64], strides = [1, 1]} : vector<2x64xf32> to vector<1x64xf32>
    %208 = tpu.concatenate %206, %207 in 1 : vector<1x64xf32>, vector<1x64xf32> -> vector<1x128xf32>
    %c0_163 = arith.constant 0 : index
    %c46 = arith.constant 46 : index
    %c0_164 = arith.constant 0 : index
    %209 = vector.load %arg16[%c0_163, %c46, %c0_164] : memref<2x48x128xf32, #tpu.memory_space<vmem>>, vector<1x1x128xf32>
    %210 = vector.shape_cast %209 : vector<1x1x128xf32> to vector<1x128xf32>
    %211 = vector.shape_cast %208 : vector<1x128xf32> to vector<1x1x128xf32>
    tpu.vector_store %arg16[%c0_163, %c46, %c0_164], %211 {strides = array<i32>} : memref<2x48x128xf32, #tpu.memory_space<vmem>>, vector<1x1x128xf32>,
    %212 = vector.extract_strided_slice %200 {offsets = [1, 0], sizes = [1, 64], strides = [1, 1]} : vector<2x64xf32> to vector<1x64xf32>
    %213 = vector.extract_strided_slice %205 {offsets = [1, 0], sizes = [1, 64], strides = [1, 1]} : vector<2x64xf32> to vector<1x64xf32>
    %214 = tpu.concatenate %212, %213 in 1 : vector<1x64xf32>, vector<1x64xf32> -> vector<1x128xf32>
    %c1_165 = arith.constant 1 : index
    %c46_166 = arith.constant 46 : index
    %c0_167 = arith.constant 0 : index
    %215 = vector.load %arg16[%c1_165, %c46_166, %c0_167] : memref<2x48x128xf32, #tpu.memory_space<vmem>>, vector<1x1x128xf32>
    %216 = vector.shape_cast %215 : vector<1x1x128xf32> to vector<1x128xf32>
    %217 = vector.shape_cast %214 : vector<1x128xf32> to vector<1x1x128xf32>
    tpu.vector_store %arg16[%c1_165, %c46_166, %c0_167], %217 {strides = array<i32>} : memref<2x48x128xf32, #tpu.memory_space<vmem>>, vector<1x1x128xf32>,
    %c0_168 = arith.constant 0 : index
    %c0_169 = arith.constant 0 : index
    %218 = vector.load %arg14[%c0_168, %c0_169] : memref<64x64xf32, #tpu.memory_space<vmem>>, vector<64x64xf32>
    %cst_170 = arith.constant dense<0.000000e+00> : vector<2x64xf32>
    %219 = tpu.matmul %205, %218, %cst_170 {dimension_numbers = #tpu.dot_dimension_numbers<[1], [0], [0], [1], [0, 0, 1, 1], [], []>} : vector<2x64xf32>, vector<64x64xf32>, vector<2x64xf32> -> vector<2x64xf32>
    %c0_171 = arith.constant 0 : index
    %c0_172 = arith.constant 0 : index
    %220 = vector.load %arg15[%c0_171, %c0_172] : memref<1x64xf32, #tpu.memory_space<vmem>>, vector<1x64xf32>
    %221 = vector.broadcast %220 : vector<1x64xf32> to vector<2x64xf32>
    %222 = arith.addf %219, %221 : vector<2x64xf32>
    %223 = vector.extract_strided_slice %222 {offsets = [0, 0], sizes = [1, 64], strides = [1, 1]} : vector<2x64xf32> to vector<1x64xf32>
    %224 = vector.extract_strided_slice %222 {offsets = [0, 0], sizes = [1, 64], strides = [1, 1]} : vector<2x64xf32> to vector<1x64xf32>
    %225 = tpu.concatenate %223, %224 in 1 : vector<1x64xf32>, vector<1x64xf32> -> vector<1x128xf32>
    %c0_173 = arith.constant 0 : index
    %c47 = arith.constant 47 : index
    %c0_174 = arith.constant 0 : index
    %226 = vector.load %arg16[%c0_173, %c47, %c0_174] : memref<2x48x128xf32, #tpu.memory_space<vmem>>, vector<1x1x128xf32>
    %227 = vector.shape_cast %226 : vector<1x1x128xf32> to vector<1x128xf32>
    %228 = vector.shape_cast %225 : vector<1x128xf32> to vector<1x1x128xf32>
    tpu.vector_store %arg16[%c0_173, %c47, %c0_174], %228 {strides = array<i32>} : memref<2x48x128xf32, #tpu.memory_space<vmem>>, vector<1x1x128xf32>,
    %229 = vector.extract_strided_slice %222 {offsets = [1, 0], sizes = [1, 64], strides = [1, 1]} : vector<2x64xf32> to vector<1x64xf32>
    %230 = vector.extract_strided_slice %222 {offsets = [1, 0], sizes = [1, 64], strides = [1, 1]} : vector<2x64xf32> to vector<1x64xf32>
    %231 = tpu.concatenate %229, %230 in 1 : vector<1x64xf32>, vector<1x64xf32> -> vector<1x128xf32>
    %c1_175 = arith.constant 1 : index
    %c47_176 = arith.constant 47 : index
    %c0_177 = arith.constant 0 : index
    %232 = vector.load %arg16[%c1_175, %c47_176, %c0_177] : memref<2x48x128xf32, #tpu.memory_space<vmem>>, vector<1x1x128xf32>
    %233 = vector.shape_cast %232 : vector<1x1x128xf32> to vector<1x128xf32>
    %234 = vector.shape_cast %231 : vector<1x128xf32> to vector<1x1x128xf32>
    tpu.vector_store %arg16[%c1_175, %c47_176, %c0_177], %234 {strides = array<i32>} : memref<2x48x128xf32, #tpu.memory_space<vmem>>, vector<1x1x128xf32>,
    return
  }
  func.func @transform_0(%arg0: i32) -> (i32, i32, i32) {
    %c0_i32 = arith.constant 0 : i32
    %c0_i32_0 = arith.constant 0 : i32
    %c0_i32_1 = arith.constant 0 : i32
    return %arg0, %c0_i32, %c0_i32_0 : i32, i32, i32
  }
  func.func @transform_1(%arg0: i32) -> (i32, i32) {
    %c0_i32 = arith.constant 0 : i32
    %c0_i32_0 = arith.constant 0 : i32
    %c0_i32_1 = arith.constant 0 : i32
    return %c0_i32, %c0_i32_0 : i32, i32
  }
  func.func @transform_2(%arg0: i32) -> (i32, i32) {
    %c0_i32 = arith.constant 0 : i32
    %c0_i32_0 = arith.constant 0 : i32
    %c0_i32_1 = arith.constant 0 : i32
    return %c0_i32, %c0_i32_0 : i32, i32
  }
  func.func @transform_3(%arg0: i32) -> (i32, i32) {
    %c0_i32 = arith.constant 0 : i32
    %c0_i32_0 = arith.constant 0 : i32
    %c0_i32_1 = arith.constant 0 : i32
    return %c0_i32, %c0_i32_0 : i32, i32
  }
  func.func @transform_4(%arg0: i32) -> (i32, i32) {
    %c0_i32 = arith.constant 0 : i32
    %c0_i32_0 = arith.constant 0 : i32
    %c0_i32_1 = arith.constant 0 : i32
    return %c0_i32, %c0_i32_0 : i32, i32
  }
  func.func @transform_5(%arg0: i32) -> (i32, i32) {
    %c0_i32 = arith.constant 0 : i32
    %c0_i32_0 = arith.constant 0 : i32
    %c0_i32_1 = arith.constant 0 : i32
    return %c0_i32, %c0_i32_0 : i32, i32
  }
  func.func @transform_6(%arg0: i32) -> (i32, i32) {
    %c0_i32 = arith.constant 0 : i32
    %c0_i32_0 = arith.constant 0 : i32
    %c0_i32_1 = arith.constant 0 : i32
    return %c0_i32, %c0_i32_0 : i32, i32
  }
  func.func @transform_7(%arg0: i32) -> (i32, i32) {
    %c0_i32 = arith.constant 0 : i32
    %c0_i32_0 = arith.constant 0 : i32
    %c0_i32_1 = arith.constant 0 : i32
    return %c0_i32, %c0_i32_0 : i32, i32
  }
  func.func @transform_8(%arg0: i32) -> (i32, i32) {
    %c0_i32 = arith.constant 0 : i32
    %c0_i32_0 = arith.constant 0 : i32
    %c0_i32_1 = arith.constant 0 : i32
    return %c0_i32, %c0_i32_0 : i32, i32
  }
  func.func @transform_9(%arg0: i32) -> (i32, i32) {
    %c0_i32 = arith.constant 0 : i32
    %c0_i32_0 = arith.constant 0 : i32
    %c0_i32_1 = arith.constant 0 : i32
    return %c0_i32, %c0_i32_0 : i32, i32
  }
  func.func @transform_10(%arg0: i32) -> (i32, i32) {
    %c0_i32 = arith.constant 0 : i32
    %c0_i32_0 = arith.constant 0 : i32
    %c0_i32_1 = arith.constant 0 : i32
    return %c0_i32, %c0_i32_0 : i32, i32
  }
  func.func @transform_11(%arg0: i32) -> (i32, i32) {
    %c0_i32 = arith.constant 0 : i32
    %c0_i32_0 = arith.constant 0 : i32
    %c0_i32_1 = arith.constant 0 : i32
    return %c0_i32, %c0_i32_0 : i32, i32
  }
  func.func @transform_12(%arg0: i32) -> (i32, i32) {
    %c0_i32 = arith.constant 0 : i32
    %c0_i32_0 = arith.constant 0 : i32
    %c0_i32_1 = arith.constant 0 : i32
    return %c0_i32, %c0_i32_0 : i32, i32
  }
  func.func @transform_13(%arg0: i32) -> (i32, i32) {
    %c0_i32 = arith.constant 0 : i32
    %c0_i32_0 = arith.constant 0 : i32
    %c0_i32_1 = arith.constant 0 : i32
    return %c0_i32, %c0_i32_0 : i32, i32
  }
  func.func @transform_14(%arg0: i32) -> (i32, i32) {
    %c0_i32 = arith.constant 0 : i32
    %c0_i32_0 = arith.constant 0 : i32
    %c0_i32_1 = arith.constant 0 : i32
    return %c0_i32, %c0_i32_0 : i32, i32
  }
  func.func @transform_15(%arg0: i32) -> (i32, i32, i32) {
    %c0_i32 = arith.constant 0 : i32
    %c0_i32_0 = arith.constant 0 : i32
    %c0_i32_1 = arith.constant 0 : i32
    return %arg0, %c0_i32, %c0_i32_0 : i32, i32, i32
  }
}

</mosaic_0001>

<bundles_post_ra>
// kernel: summarizer_forward.1
= control target key start
LH: loop header
LB: loop body
LE: loop exit
PB: predicated region body
PF: predicated region fallthrough
CT: control target
= control target key end

     0   :  { %20 = vsyncpa [#allocation8], 0  ;;  %s2859_s0 = inlined_call_operand.vmem [shape: f32[2,32,384], index: 0, kind: input, shape index: {}]   ;;  %s2860_s1 = inlined_call_operand.vmem [shape: f32[384,64], index: 1, kind: input, shape index: {}]   ;;  %s2861_s2 = inlined_call_operand.vmem [shape: f32[1,64], index: 2, kind: input, shape index: {}]   ;;  %s2862_s3 = inlined_call_operand.vmem [shape: f32[192,64], index: 3, kind: input, shape index: {}]   ;;  %s2863_s4 = inlined_call_operand.vmem [shape: f32[1,64], index: 4, kind: input, shape index: {}]   ;;  %s2864_s5 = inlined_call_operand.vmem [shape: f32[192,64], index: 5, kind: input, shape index: {}]   ;;  %s2865_s6 = inlined_call_operand.vmem [shape: f32[1,64], index: 6, kind: input, shape index: {}]   ;;  %s2866_s7 = inlined_call_operand.hbm [shape: f32[192,64], index: 7, kind: input, shape index: {}]   ;;  %s2867_s8 = inlined_call_operand.vmem [shape: f32[1,64], index: 8, kind: input, shape index: {}]   ;;  %s2868_s9 = inlined_call_operand.hbm [shape: f32[192,64], index: 9, kind: input, shape index: {}]   ;;  %s2869_s10 = inlined_call_operand.hbm [shape: f32[1,64], index: 10, kind: input, shape index: {}]   ;;  %s2870_s11 = inlined_call_operand.hbm [shape: f32[128,64], index: 11, kind: input, shape index: {}]   ;;  %s2871_s12 = inlined_call_operand.hbm [shape: f32[1,64], index: 12, kind: input, shape index: {}]   ;;  %s2872_s13 = inlined_call_operand.vmem [shape: f32[64,64], index: 13, kind: input, shape index: {}]   ;;  %s2873_s14 = inlined_call_operand.hbm [shape: f32[1,64], index: 14, kind: input, shape index: {}]   ;;  %s2874_s15 = inlined_call_operand.vmem [shape: f32[2,48,128], index: 15, kind: output, shape index: {}]  }
   0x1   :  { %21 = vsyncpa [#allocation10], 0 }
   0x2   :  { %22 = vsyncpa [#allocation13], 0 }
   0x3   :  { %23 = vsyncpa [#allocation16], 0  ;;  %s1978_s18 = smov [#allocation9]   ;;  %s1979_s20 = smov [#allocation12]  }
   0x4   :  { %s57_s19 = sshll.u32 %s1978_s18, 4  ;;  %s79_s21 = sshll.u32 %s1979_s20, 4  ;;  %s58_s19 = int_to_ptr.vmem [resolvable:$true] %s57_s19  ;;  %s2070_s21 = int_to_ptr.vmem [resolvable:$true] %s79_s21 }
   0x5   :  { %s1838_s24 = scalar_lea.hbm %s2868_s9, 3072 }
   0x6   :  { %p1839_p0 = scmp.ne.s32.totalorder %s2868_s9, %s1838_s24  ;;  %p1842_p1 = scmp.lt.u32.totalorder %s1838_s24, %s2868_s9 }
   0x8   :  { %p1844_p2 = pnand %p1842_p1, %p1839_p0 }
   0xa   :  { %1847 = shalt.err (!%p1844_p2)
}
   0xb   :  { %s1848_s29 = scalar_lea.vmem %s58_s19, 3072  ;;  %p1853_p4 = scmp.lt.s32.totalorder %s58_s19, %s58_s19 }
   0xc   :  { %p1849_p3 = scmp.ne.s32.totalorder %s58_s19, %s1848_s29  ;;  %p1854_p5 = scmp.lt.s32.totalorder %s1848_s29, %s1848_s29 }
   0xe   :  { %p1855_p6 = por %p1854_p5, %p1853_p4 }
  0x10   :  { %p1856_p7 = pnand %p1855_p6, %p1849_p3 }
  0x12   :  { %1859 = shalt.err (!%p1856_p7)
}
  0x13   :  { %s1980_s30 = smov 128   ;;  %s1981_s16 = smov 8  }
  0x14   :  { %63 = dma.hbm_to_vmem [thread:$0]  %s2868_s9, 3072, %s58_s19, [#allocation10], %s1980_s30, %s1980_s30, %s1981_s16  }
  0x15   :  { %s1860_s23 = scalar_lea.hbm %s2870_s11, 2048 }
  0x16   :  { %p1861_p8 = scmp.ne.s32.totalorder %s2870_s11, %s1860_s23  ;;  %p1864_p9 = scmp.lt.u32.totalorder %s1860_s23, %s2870_s11 }
  0x18   :  { %p1866_p10 = pnand %p1864_p9, %p1861_p8 }
  0x1a   :  { %1869 = shalt.err (!%p1866_p10)
}
  0x1b   :  { %s1870_s28 = scalar_lea.vmem %s2070_s21, 2048  ;;  %p1875_p12 = scmp.lt.s32.totalorder %s2070_s21, %s2070_s21 }
  0x1c   :  { %p1871_p11 = scmp.ne.s32.totalorder %s2070_s21, %s1870_s28  ;;  %p1876_p13 = scmp.lt.s32.totalorder %s1870_s28, %s1870_s28 }
  0x1e   :  { %p1877_p0 = por %p1876_p13, %p1875_p12 }
  0x20   :  { %p1878_p1 = pnand %p1877_p0, %p1871_p11 }
  0x22   :  { %1881 = shalt.err (!%p1878_p1)
}
  0x23   :  { %85 = dma.hbm_to_vmem [thread:$0]  %s2870_s11, 2048, %s2070_s21, [#allocation13], %s1980_s30, %s1980_s30, %s1981_s16  }
  0x24   :  { %s1982_s29 = smov [#allocation7]   ;;  %s1983_s18 = smov [#allocation11]  }
  0x25   :  { %s43_s17 = sshll.u32 %s1982_s29, 4  ;;  %s70_s20 = sshll.u32 %s1983_s18, 4  ;;  %s44_s17 = int_to_ptr.vmem [resolvable:$true] %s43_s17  ;;  %s71_s20 = int_to_ptr.vmem [resolvable:$true] %s70_s20 }
  0x26   :  { %s1882_s24 = scalar_lea.hbm %s2866_s7, 3072 }
  0x27   :  { %p1883_p2 = scmp.ne.s32.totalorder %s2866_s7, %s1882_s24  ;;  %p1886_p3 = scmp.lt.u32.totalorder %s1882_s24, %s2866_s7 }
  0x29   :  { %p1888_p4 = pnand %p1886_p3, %p1883_p2 }
  0x2b   :  { %1891 = shalt.err (!%p1888_p4)
}
  0x2c   :  { %s1892_s11 = scalar_lea.vmem %s44_s17, 3072  ;;  %p1897_p6 = scmp.lt.s32.totalorder %s44_s17, %s44_s17 }
  0x2d   :  { %p1893_p5 = scmp.ne.s32.totalorder %s44_s17, %s1892_s11  ;;  %p1898_p7 = scmp.lt.s32.totalorder %s1892_s11, %s1892_s11 }
  0x2f   :  { %p1899_p8 = por %p1898_p7, %p1897_p6 }
  0x31   :  { %p1900_p9 = pnand %p1899_p8, %p1893_p5 }
  0x33   :  { %1903 = shalt.err (!%p1900_p9)
}
  0x34   :  { %49 = dma.hbm_to_vmem [thread:$0]  %s2866_s7, 3072, %s44_s17, [#allocation8], %s1980_s30, %s1980_s30, %s1981_s16  }
  0x35   :  { %s1904_s18 = scalar_lea.hbm %s2869_s10, 16 }
  0x36   :  { %p1905_p10 = scmp.ne.s32.totalorder %s2869_s10, %s1904_s18  ;;  %p1908_p11 = scmp.lt.u32.totalorder %s1904_s18, %s2869_s10 }
  0x38   :  { %p1910_p12 = pnand %p1908_p11, %p1905_p10 }
  0x3a   :  { %1913 = shalt.err (!%p1910_p12)
}
  0x3b   :  { %s1914_s26 = scalar_lea.vmem %s71_s20, 16  ;;  %s1918_s27 = scalar_lea.vmem %s71_s20, 32 }
  0x3c   :  { %p1915_p13 = scmp.ne.s32.totalorder %s71_s20, %s1914_s26  ;;  %p1919_p0 = scmp.lt.s32.totalorder %s71_s20, %s71_s20 }
  0x3d   :  { %p1920_p1 = scmp.lt.s32.totalorder %s1918_s27, %s1914_s26 }
  0x3f   :  { %p1921_p2 = por %p1920_p1, %p1919_p0 }
  0x41   :  { %p1922_p3 = pnand %p1921_p2, %p1915_p13 }
  0x43   :  { %1925 = shalt.err (!%p1922_p3)
}
  0x44   :  { %73 = dma.hbm_to_vmem [thread:$0]  %s2869_s10, 16, %s71_s20, [#allocation10]  }
  0x45   :  { %s1984_s16 = smov [#allocation14]   ;;  %s1985_s28 = smov [#allocation15]  }
  0x46   :  { %s92_s17 = sshll.u32 %s1984_s16, 4  ;;  %s104_s11 = sshll.u32 %s1985_s28, 4  ;;  %s93_s17 = int_to_ptr.vmem [resolvable:$true] %s92_s17  ;;  %s105_s11 = int_to_ptr.vmem [resolvable:$true] %s104_s11 }
  0x47   :  { %s1926_s19 = scalar_lea.hbm %s2871_s12, 16 }
  0x48   :  { %p1927_p4 = scmp.ne.s32.totalorder %s2871_s12, %s1926_s19  ;;  %p1930_p5 = scmp.lt.u32.totalorder %s1926_s19, %s2871_s12 }
  0x4a   :  { %p1932_p6 = pnand %p1930_p5, %p1927_p4 }
  0x4c   :  { %1935 = shalt.err (!%p1932_p6)
}
  0x4d   :  { %s1936_s10 = scalar_lea.vmem %s93_s17, 16  ;;  %s1940_s20 = scalar_lea.vmem %s93_s17, 32 }
  0x4e   :  { %p1937_p7 = scmp.ne.s32.totalorder %s93_s17, %s1936_s10  ;;  %p1941_p8 = scmp.lt.s32.totalorder %s93_s17, %s93_s17 }
  0x4f   :  { %p1942_p9 = scmp.lt.s32.totalorder %s1940_s20, %s1936_s10 }
  0x51   :  { %p1943_p10 = por %p1942_p9, %p1941_p8 }
  0x53   :  { %p1944_p11 = pnand %p1943_p10, %p1937_p7 }
  0x55   :  { %1947 = shalt.err (!%p1944_p11)
}
  0x56   :  { %95 = dma.hbm_to_vmem [thread:$0]  %s2871_s12, 16, %s93_s17, [#allocation13]  }
  0x57   :  { %s1948_s7 = scalar_lea.hbm %s2873_s14, 16 }
  0x58   :  { %p1949_p12 = scmp.ne.s32.totalorder %s2873_s14, %s1948_s7  ;;  %p1952_p13 = scmp.lt.u32.totalorder %s1948_s7, %s2873_s14 }
  0x5a   :  { %p1954_p0 = pnand %p1952_p13, %p1949_p12 }
  0x5c   :  { %1957 = shalt.err (!%p1954_p0)
}
  0x5d   :  { %s1958_s9 = scalar_lea.vmem %s105_s11, 16  ;;  %s1962_s19 = scalar_lea.vmem %s105_s11, 32 }
  0x5e   :  { %p1959_p1 = scmp.ne.s32.totalorder %s105_s11, %s1958_s9  ;;  %p1963_p2 = scmp.lt.s32.totalorder %s105_s11, %s105_s11 }
  0x5f   :  { %p1964_p3 = scmp.lt.s32.totalorder %s1962_s19, %s1958_s9 }
  0x61   :  { %p1965_p4 = por %p1964_p3, %p1963_p2 }
  0x63   :  { %p1966_p5 = pnand %p1965_p4, %p1959_p1 }
  0x65   :  { %1969 = shalt.err (!%p1966_p5)
}
  0x66   :  { %107 = dma.hbm_to_vmem [thread:$0]  %s2873_s14, 16, %s105_s11, [#allocation16]  }
  0x67   :  { %1970 = dma.done.wait [#allocation8], 3072  }
  0x68   :  { %1971 = vsyncadd [#allocation8], 4294964224 }
  0x69   :  { %1972 = dma.done.wait [#allocation10], 3088  }
  0x6a   :  { %1973 = vsyncadd [#allocation10], 4294964208 }
  0x6b   :  { %1974 = dma.done.wait [#allocation13], 2064  }
  0x6c   :  { %1975 = vsyncadd [#allocation13], 4294965232 }
  0x6d   :  { %1976 = dma.done.wait [#allocation16], 16  }
  0x6e   :  { %1977 = vsyncadd [#allocation16], 4294967280  ;;  %v166_v0 = vld [vmem:[%s2860_s1 + $0x80] sm:$0xff]  ;;  %v167_v1 = vld [vmem:[%s2860_s1 + $0x88] sm:$0xff]  ;;  %vm441_vm0 = vcmask 516096   ;;  %vm423_vm1 = vcmask 523264  }
  0x6f   :  { %v150_v2 = vld [vmem:[%s2860_s1] sm:$0xff]  ;;  %v1582_v3 = vpack.c.bf16 %v167_v1, %v166_v0  ;;  %v151_v4 = vld [vmem:[%s2860_s1 + $0x8] sm:$0xff]  ;;  %v168_v5 = vld [vmem:[%s2860_s1 + $0x90] sm:$0xff]  ;;  %vm853_vm8 = vcmask 1043456   ;;  %vm972_vm9 = vcmask 519168   ;;  %vm976_vm11 = vcmask 523268  }
  0x70   :  { %v169_v6 = vld [vmem:[%s2860_s1 + $0x98] sm:$0xff]  ;;  %v1584_v7 = vpack.c.bf16 %v151_v4, %v150_v2  ;;  %v182_v9 = vld [vmem:[%s2860_s1 + $0x100] sm:$0xff]  ;;  %v183_v10 = vld [vmem:[%s2860_s1 + $0x108] sm:$0xff]  ;;  %vm1005_vm12 = vcmask 1041408   ;;  %vm1122_vm13 = vcmask 517120   ;;  %vm1124_vm15 = vcmask 519170  }
  0x71   :  { %v1586_v8 = vpack.c.bf16 %v169_v6, %v168_v5  ;;  %v152_v11 = vld [vmem:[%s2860_s1 + $0x10] sm:$0xff]  ;;  %1583 = vmatprep.subr.bf16.mxu0 %v1582_v3  ;;  %v1614_v12 = vpack.c.bf16 %v183_v10, %v182_v9  ;;  %v153_v13 = vld [vmem:[%s2860_s1 + $0x18] sm:$0xff]  ;;  %v170_v14 = vld [vmem:[%s2860_s1 + $0xa0] sm:$0xff] }
  0x72   :  { %v171_v15 = vld [vmem:[%s2860_s1 + $0xa8] sm:$0xff]  ;;  %1585 = vmatpush3.bf16.msra.mxu0 %v1584_v7  ;;  %v1588_v16 = vpack.c.bf16 %v153_v13, %v152_v11  ;;  %v184_v17 = vld [vmem:[%s2860_s1 + $0x110] sm:$0xff]  ;;  %v185_v18 = vld [vmem:[%s2860_s1 + $0x118] sm:$0xff] }
  0x73   :  { %1587 = vmatprep.subr.bf16.mxu0 %v1586_v8  ;;  %1615 = vmatprep.subr.bf16.mxu1 %v1614_v12  ;;  %v1590_v19 = vpack.c.bf16 %v171_v15, %v170_v14  ;;  %v1618_v20 = vpack.c.bf16 %v185_v18, %v184_v17  ;;  %v154_v21 = vld [vmem:[%s2860_s1 + $0x20] sm:$0xff]  ;;  %v155_v22 = vld [vmem:[%s2860_s1 + $0x28] sm:$0xff]  ;;  %v172_v23 = vld [vmem:[%s2860_s1 + $0xb0] sm:$0xff] }
  0x74   :  { %1617 = vmatpush3.bf16.msra.mxu1 %v1614_v12  ;;  %v173_v24 = vld [vmem:[%s2860_s1 + $0xb8] sm:$0xff]  ;;  %v186_v25 = vld [vmem:[%s2860_s1 + $0x120] sm:$0xff]  ;;  %v187_v26 = vld [vmem:[%s2860_s1 + $0x128] sm:$0xff]  ;;  %v1592_v28 = vpack.c.bf16 %v155_v22, %v154_v21 }
  0x75   :  { %1619 = vmatprep.subr.bf16.mxu1 %v1618_v20  ;;  %v1622_v27 = vpack.c.bf16 %v187_v26, %v186_v25  ;;  %v188_v29 = vld [vmem:[%s2860_s1 + $0x130] sm:$0xff]  ;;  %v189_v30 = vld [vmem:[%s2860_s1 + $0x138] sm:$0xff]  ;;  %v1594_v31 = vpack.c.bf16 %v173_v24, %v172_v23  ;;  %v174_v34 = vld [vmem:[%s2860_s1 + $0xc0] sm:$0xff] }
  0x76   :  { %1589 = vmatpush3.bf16.msra.mxu0 %v1588_v16  ;;  %v156_v32 = vld [vmem:[%s2860_s1 + $0x30] sm:$0xff]  ;;  %v157_v33 = vld [vmem:[%s2860_s1 + $0x38] sm:$0xff]  ;;  %v175_v35 = vld [vmem:[%s2860_s1 + $0xc8] sm:$0xff]  ;;  %v1626_v36 = vpack.c.bf16 %v189_v30, %v188_v29 }
  0x77   :  { %1591 = vmatprep.subr.bf16.mxu0 %v1590_v19  ;;  %v1596_v37 = vpack.c.bf16 %v157_v33, %v156_v32  ;;  %v190_v38 = vld [vmem:[%s2860_s1 + $0x140] sm:$0xff]  ;;  %v191_v39 = vld [vmem:[%s2860_s1 + $0x148] sm:$0xff]  ;;  %v1598_v40 = vpack.c.bf16 %v175_v35, %v174_v34  ;;  %v176_v43 = vld [vmem:[%s2860_s1 + $0xd0] sm:$0xff]  ;;  %v1986_v32 = vmov 0.0  }
  0x78   :  { %1621 = vmatpush3.bf16.msra.mxu1 %v1618_v20  ;;  %v158_v41 = vld [vmem:[%s2860_s1 + $0x40] sm:$0xff]  ;;  %v159_v42 = vld [vmem:[%s2860_s1 + $0x48] sm:$0xff]  ;;  %v177_v44 = vld [vmem:[%s2860_s1 + $0xd8] sm:$0xff]  ;;  %v1630_v45 = vpack.c.bf16 %v191_v39, %v190_v38  ;;  %442 = vst.msk [vmem:[#allocation2] sm:$0x1] %vm441_vm0, %v1986_v32 }
  0x79   :  { %1623 = vmatprep.subr.bf16.mxu1 %v1622_v27  ;;  %v127_v46 = vld [vmem:[%s2859_s0 + $0x8] sm:$0xff]  ;;  %v1600_v47 = vpack.c.bf16 %v159_v42, %v158_v41  ;;  %v192_v48 = vld [vmem:[%s2860_s1 + $0x150] sm:$0xff]  ;;  %v193_v49 = vld [vmem:[%s2860_s1 + $0x158] sm:$0xff]  ;;  %v1602_v50 = vpack.c.bf16 %v177_v44, %v176_v43  ;;  %448 = vst.msk [vmem:[#allocation2 + $0x22] sm:$0x1] %vm441_vm0, %v1986_v32 }
  0x7a   :  { %1593 = vmatpush3.bf16.msra.mxu0 %v1592_v28  ;;  %269 = vmatprep.mubr.f32.mxu0 %v127_v46  ;;  %v160_v51 = vld [vmem:[%s2860_s1 + $0x50] sm:$0xff]  ;;  %v161_v52 = vld [vmem:[%s2860_s1 + $0x58] sm:$0xff]  ;;  %v178_v54 = vld [vmem:[%s2860_s1 + $0xe0] sm:$0xff]  ;;  %v1634_v56 = vpack.c.bf16 %v193_v49, %v192_v48  ;;  %661 = vst.msk [vmem:[#allocation3] sm:$0x1] %vm441_vm0, %v1986_v32 }
  0x7b   :  { %1595 = vmatprep.subr.bf16.mxu0 %v1594_v31  ;;  %v128_v53 = vld [vmem:[%s2859_s0 + $0x10] sm:$0xff]  ;;  %v179_v55 = vld [vmem:[%s2860_s1 + $0xe8] sm:$0xff]  ;;  %v1604_v57 = vpack.c.bf16 %v161_v52, %v160_v51  ;;  %v194_v58 = vld [vmem:[%s2860_s1 + $0x160] sm:$0xff]  ;;  %665 = vst.msk [vmem:[#allocation3 + $0x12] sm:$0x1] %vm441_vm0, %v1986_v32 }
  0x7c   :  { %1625 = vmatpush3.bf16.msra.mxu1 %v1622_v27  ;;  %1516 = vmatprep.mubr.f32.mxu1 %v128_v53  ;;  %v195_v59 = vld [vmem:[%s2860_s1 + $0x168] sm:$0xff]  ;;  %v1606_v60 = vpack.c.bf16 %v179_v55, %v178_v54  ;;  %v162_v61 = vld [vmem:[%s2860_s1 + $0x60] sm:$0xff]  ;;  %v180_v63 = vld [vmem:[%s2860_s1 + $0xf0] sm:$0xff]  ;;  %820 = vst.msk [vmem:[#allocation4] sm:$0x1] %vm441_vm0, %v1986_v32 }
  0x7d   :  { %1627 = vmatprep.subr.bf16.mxu1 %v1626_v36  ;;  %v163_v62 = vld [vmem:[%s2860_s1 + $0x68] sm:$0xff]  ;;  %v181_v0 = vld [vmem:[%s2860_s1 + $0xf8] sm:$0xff]  ;;  %v1638_v1 = vpack.c.bf16 %v195_v59, %v194_v58  ;;  %v196_v3 = vld [vmem:[%s2860_s1 + $0x170] sm:$0xff]  ;;  %823 = vst.msk [vmem:[#allocation4 + $0xa] sm:$0x1] %vm441_vm0, %v1986_v32 }
  0x7e   :  { %1597 = vmatpush3.bf16.msra.mxu0 %v1596_v37  ;;  %v1608_v2 = vpack.c.bf16 %v163_v62, %v162_v61  ;;  %v197_v4 = vld [vmem:[%s2860_s1 + $0x178] sm:$0xff]  ;;  %v1610_v5 = vpack.c.bf16 %v181_v0, %v180_v63  ;;  %v164_v6 = vld [vmem:[%s2860_s1 + $0x70] sm:$0xff]  ;;  %v126_v10 = vld [vmem:[%s2859_s0] sm:$0xff]  ;;  %970 = vst.msk [vmem:[#allocation5] sm:$0x1] %vm441_vm0, %v1986_v32 }
  0x7f   :  { %1599 = vmatprep.subr.bf16.mxu0 %v1598_v40  ;;  %v165_v7 = vld [vmem:[%s2860_s1 + $0x78] sm:$0xff]  ;;  %v1642_v8 = vpack.c.bf16 %v197_v4, %v196_v3  ;;  %v130_v11 = vld [vmem:[%s2859_s0 + $0x20] sm:$0xff]  ;;  %v131_v12 = vld [vmem:[%s2859_s0 + $0x28] sm:$0xff]  ;;  %974 = vst.msk [vmem:[#allocation5 + $0x6] sm:$0x1] %vm441_vm0, %v1986_v32  ;;  %vm1989_vm0 = vmmov 0  }
  0x80   :  { %1629 = vmatpush3.bf16.msra.mxu1 %v1626_v36  ;;  %v1612_v9 = vpack.c.bf16 %v165_v7, %v164_v6  ;;  %v134_v13 = vld [vmem:[%s2859_s0 + $0x40] sm:$0xff]  ;;  %v129_v14 = vld [vmem:[%s2859_s0 + $0x18] sm:$0xff]  ;;  %v140_v17 = vld [vmem:[%s2859_s0 + $0x70] sm:$0xff]  ;;  %v1987_v36 = vmov 0.0|0.0  }
  0x81   :  { %1631 = vmatprep.subr.bf16.mxu1 %v1630_v45  ;;  %v133_v15 = vld [vmem:[%s2859_s0 + $0x38] sm:$0xff]  ;;  %v132_v18 = vld [vmem:[%s2859_s0 + $0x30] sm:$0xff]  ;;  %v143_v20 = vld [vmem:[%s2859_s0 + $0x88] sm:$0xff] }
  0x82   :  { %1601 = vmatpush3.bf16.msra.mxu0 %v1600_v47  ;;  %v137_v16 = vld [vmem:[%s2859_s0 + $0x58] sm:$0xff]  ;;  %v136_v19 = vld [vmem:[%s2859_s0 + $0x50] sm:$0xff]  ;;  %v146_v21 = vld [vmem:[%s2859_s0 + $0xa0] sm:$0xff] }
  0x83   :  { %1603 = vmatprep.subr.bf16.mxu0 %v1602_v50  ;;  %v135_v22 = vld [vmem:[%s2859_s0 + $0x48] sm:$0xff]  ;;  %v149_v24 = vld [vmem:[%s2859_s0 + $0xb8] sm:$0xff]  ;;  %v138_v25 = vld [vmem:[%s2859_s0 + $0x60] sm:$0xff] }
  0x84   :  { %1633 = vmatpush3.bf16.msra.mxu1 %v1630_v45  ;;  %v139_v23 = vld [vmem:[%s2859_s0 + $0x68] sm:$0xff]  ;;  %v142_v26 = vld [vmem:[%s2859_s0 + $0x80] sm:$0xff]  ;;  %v141_v27 = vld [vmem:[%s2859_s0 + $0x78] sm:$0xff] }
  0x85   :  { %1635 = vmatprep.subr.bf16.mxu1 %v1634_v56  ;;  %v145_v28 = vld [vmem:[%s2859_s0 + $0x98] sm:$0xff]  ;;  %v144_v29 = vld [vmem:[%s2859_s0 + $0x90] sm:$0xff]  ;;  %v147_v31 = vld [vmem:[%s2859_s0 + $0xa8] sm:$0xff] }
  0x86   :  { %1605 = vmatpush3.bf16.msra.mxu0 %v1604_v57  ;;  %v148_v30 = vld [vmem:[%s2859_s0 + $0xb0] sm:$0xff]  ;;  %v497_v33 = vld [vmem:[%s2862_s3] sm:$0xff]  ;;  %v498_v34 = vld [vmem:[%s2862_s3 + $0x8] sm:$0xff] }
  0x87   :  { %1607 = vmatprep.subr.bf16.mxu0 %v1606_v60  ;;  %v499_v35 = vld [vmem:[%s2862_s3 + $0x10] sm:$0xff]  ;;  %v1647_v37 = vpack.c.bf16 %v498_v34, %v497_v33  ;;  %v500_v38 = vld [vmem:[%s2862_s3 + $0x18] sm:$0xff]  ;;  %v501_v40 = vld [vmem:[%s2862_s3 + $0x20] sm:$0xff] }
  0x88   :  { %1637 = vmatpush3.bf16.msra.mxu1 %v1634_v56  ;;  %v1650_v39 = vpack.c.bf16 %v500_v38, %v499_v35  ;;  %v502_v41 = vld [vmem:[%s2862_s3 + $0x28] sm:$0xff]  ;;  %v503_v43 = vld [vmem:[%s2862_s3 + $0x30] sm:$0xff]  ;;  %v504_v44 = vld [vmem:[%s2862_s3 + $0x38] sm:$0xff] }
  0x89   :  { %1639 = vmatprep.subr.bf16.mxu1 %v1638_v1  ;;  %v1653_v42 = vpack.c.bf16 %v502_v41, %v501_v40  ;;  %v1656_v45 = vpack.c.bf16 %v504_v44, %v503_v43  ;;  %v505_v46 = vld [vmem:[%s2862_s3 + $0x40] sm:$0xff]  ;;  %v506_v47 = vld [vmem:[%s2862_s3 + $0x48] sm:$0xff]  ;;  %v507_v49 = vld [vmem:[%s2862_s3 + $0x50] sm:$0xff] }
  0x8a   :  { %1609 = vmatpush3.bf16.msra.mxu0 %v1608_v2  ;;  %v1659_v48 = vpack.c.bf16 %v506_v47, %v505_v46  ;;  %v508_v50 = vld [vmem:[%s2862_s3 + $0x58] sm:$0xff]  ;;  %v509_v52 = vld [vmem:[%s2862_s3 + $0x60] sm:$0xff]  ;;  %v510_v53 = vld [vmem:[%s2862_s3 + $0x68] sm:$0xff] }
  0x8b   :  { %1611 = vmatprep.subr.bf16.mxu0 %v1610_v5  ;;  %v1662_v51 = vpack.c.bf16 %v508_v50, %v507_v49  ;;  %v1665_v54 = vpack.c.bf16 %v510_v53, %v509_v52  ;;  %v511_v55 = vld [vmem:[%s2862_s3 + $0x70] sm:$0xff]  ;;  %v512_v56 = vld [vmem:[%s2862_s3 + $0x78] sm:$0xff]  ;;  %v513_v58 = vld [vmem:[%s2862_s3 + $0x80] sm:$0xff] }
  0x8c   :  { %1641 = vmatpush3.bf16.msra.mxu1 %v1638_v1  ;;  %v1668_v57 = vpack.c.bf16 %v512_v56, %v511_v55  ;;  %v514_v59 = vld [vmem:[%s2862_s3 + $0x88] sm:$0xff]  ;;  %v515_v61 = vld [vmem:[%s2862_s3 + $0x90] sm:$0xff]  ;;  %v516_v62 = vld [vmem:[%s2862_s3 + $0x98] sm:$0xff] }
  0x8d   :  { %1643 = vmatprep.subr.bf16.mxu1 %v1642_v8  ;;  %v1671_v60 = vpack.c.bf16 %v514_v59, %v513_v58  ;;  %v1674_v63 = vpack.c.bf16 %v516_v62, %v515_v61  ;;  %v517_v0 = vld [vmem:[%s2862_s3 + $0xa0] sm:$0xff]  ;;  %v518_v1 = vld [vmem:[%s2862_s3 + $0xa8] sm:$0xff]  ;;  %v519_v3 = vld [vmem:[%s2862_s3 + $0xb0] sm:$0xff] }
  0x8e   :  { %1613 = vmatpush3.bf16.msra.mxu0 %v1612_v9  ;;  %v1677_v2 = vpack.c.bf16 %v518_v1, %v517_v0  ;;  %v520_v4 = vld [vmem:[%s2862_s3 + $0xb8] sm:$0xff] }
  0x8f   :  { %1646 = vmatprep.subr.bf16.mxu0 %v1987_v36  ;;  %v1680_v5 = vpack.c.bf16 %v520_v4, %v519_v3 }
  0x90   :  { %1645 = vmatpush3.bf16.msra.mxu1 %v1642_v8  ;;  %v1353_v8 = vld [vmem:[%s2861_s2] ss:$0 sm:$0xff]  ;;  %s1988_s2 = smov 64  }
  0x91   :  { %270 = vmatmul.mubr.f32.vlgmr.msra.gmra.mrb[0].mxu0 %v126_v10  ;;  %1682 = vmatprep.subr.bf16.mxu1 %v1987_v36 }
  0x92   :  { %274 = vmatprep.mubr.f32.mxu0 %v130_v11  ;;  %1648 = vmatpush1.bf16.msra.mxu0 %v1647_v37 }
  0x93   :  { %1517 = vmatmul.mubr.f32.vlgmr.msra.gmra.mrb[0].mxu1 %v131_v12  ;;  %1649 = vmatprep.subr.bf16.mxu0 %v1987_v36 }
  0x94   :  { %1519 = vmatprep.mubr.f32.mxu1 %v134_v13 }
  0x95   :  { %275 = vmatmul.mubr.f32.gmra.mrb[2].mxu0 %v129_v14 }
  0x96   :  { %279 = vmatprep.mubr.f32.mxu0 %v133_v15  ;;  %1651 = vmatpush1.bf16.msra.mxu0 %v1650_v39 }
  0x97   :  { %1520 = vmatmul.mubr.f32.gmra.mrb[2].mxu1 %v137_v16  ;;  %1652 = vmatprep.subr.bf16.mxu0 %v1987_v36 }
  0x98   :  { %1522 = vmatprep.mubr.f32.mxu1 %v140_v17 }
  0x99   :  { %280 = vmatmul.mubr.f32.gmra.mrb[4].mxu0 %v132_v18 }
  0x9a   :  { %284 = vmatprep.mubr.f32.mxu0 %v136_v19  ;;  %1654 = vmatpush1.bf16.msra.mxu0 %v1653_v42 }
  0x9b   :  { %1523 = vmatmul.mubr.f32.gmra.mrb[4].mxu1 %v143_v20  ;;  %1655 = vmatprep.subr.bf16.mxu0 %v1987_v36 }
  0x9c   :  { %1525 = vmatprep.mubr.f32.mxu1 %v146_v21 }
  0x9d   :  { %285 = vmatmul.mubr.f32.gmra.mrb[6].mxu0 %v135_v22 }
  0x9e   :  { %289 = vmatprep.mubr.f32.mxu0 %v139_v23  ;;  %1657 = vmatpush1.bf16.msra.mxu0 %v1656_v45 }
  0x9f   :  { %1526 = vmatmul.mubr.f32.gmra.mrb[6].mxu1 %v149_v24  ;;  %1658 = vmatprep.subr.bf16.mxu0 %v1987_v36 }
  0xa1   :  { %290 = vmatmul.mubr.f32.gmra.mrb[8].mxu0 %v138_v25 }
  0xa2   :  { %294 = vmatprep.mubr.f32.mxu0 %v142_v26  ;;  %1660 = vmatpush1.bf16.msra.mxu0 %v1659_v48 }
  0xa3   :  { %1661 = vmatprep.subr.bf16.mxu0 %v1987_v36 }
  0xa5   :  { %295 = vmatmul.mubr.f32.gmra.mrb[10].mxu0 %v141_v27 }
  0xa6   :  { %299 = vmatprep.mubr.f32.mxu0 %v145_v28  ;;  %1663 = vmatpush1.bf16.msra.mxu0 %v1662_v51 }
  0xa7   :  { %1664 = vmatprep.subr.bf16.mxu0 %v1987_v36 }
  0xa9   :  { %300 = vmatmul.mubr.f32.gmra.mrb[12].mxu0 %v144_v29 }
  0xaa   :  { %304 = vmatprep.mubr.f32.mxu0 %v148_v30  ;;  %1666 = vmatpush1.bf16.msra.mxu0 %v1665_v54 }
  0xab   :  { %1667 = vmatprep.subr.bf16.mxu0 %v1987_v36 }
  0xad   :  { %305 = vmatmul.mubr.f32.gmra.mrb[14].mxu0 %v147_v31 }
  0xae   :  { %1669 = vmatpush1.bf16.msra.mxu0 %v1668_v57 }
  0xaf   :  { %1670 = vmatprep.subr.bf16.mxu0 %v1987_v36 }
  0xb2   :  { %1672 = vmatpush1.bf16.msra.mxu0 %v1671_v60 }
  0xb3   :  { %1673 = vmatprep.subr.bf16.mxu0 %v1987_v36 }
  0xb6   :  { %1675 = vmatpush1.bf16.msra.mxu0 %v1674_v63 }
  0xb7   :  { %1676 = vmatprep.subr.bf16.mxu0 %v1987_v36 }
  0xba   :  { %1678 = vmatpush1.bf16.msra.mxu0 %v1677_v2 }
  0xbb   :  { %1679 = vmatprep.subr.bf16.mxu0 %v1987_v36 }
  0xbe   :  { %1681 = vmatpush1.bf16.msra.mxu0 %v1680_v5 }
  0xbf   :  { %1718 = vmatprep.subr.bf16.mxu0 %v1987_v36 }
 0x164   :  { %v1410_v6 = vpop.f32.mrb[0].mxu0 }
 0x165   :  { %v1411_v7 = vpop.f32.mrb[1].mxu0 }
 0x166   :  { %v1412_v9 = vadd.f32 %v1411_v7, %v1410_v6  ;;  %v1518_v10 = vpop.f32.mrb[0].mxu1 }
 0x167   :  { %v376_v11 = vpop.f32.mrb[1].mxu1 }
 0x168   :  { %v1413_v12 = vpop.f32.mrb[2].mxu0  ;;  %v272_v13 = vadd.f32 %v1412_v9, %v1353_v8 }
 0x169   :  { %v1414_v14 = vpop.f32.mrb[3].mxu0 }
 0x16a   :  { %v1415_v15 = vadd.f32 %v1414_v14, %v1413_v12  ;;  %v2471_v16 = vadd.f32 %v376_v11, %v272_v13  ;;  %v1521_v17 = vpop.f32.mrb[2].mxu1  ;;  %v690_v13 = vld [vmem:[%s2864_s5] sm:$0xff]  ;;  %v691_v14 = vld [vmem:[%s2864_s5 + $0x8] sm:$0xff] }
 0x16b   :  { %v386_v18 = vpop.f32.mrb[3].mxu1 }
 0x16c   :  { %v277_v19 = vadd.f32 %v1415_v15, %v1353_v8  ;;  %444 = vst.msk [vmem:[#allocation2 + $0x1] sm:$0xff] %vm423_vm1, %v2471_v16  ;;  %v1416_v20 = vpop.f32.mrb[4].mxu0  ;;  %v692_v15 = vld [vmem:[%s2864_s5 + $0x10] sm:$0xff] }
 0x16d   :  { %v1417_v21 = vpop.f32.mrb[5].mxu0 }
 0x16e   :  { %v2475_v22 = vadd.f32 %v1518_v10, %v277_v19  ;;  %v1418_v23 = vadd.f32 %v1417_v21, %v1416_v20  ;;  %v1524_v24 = vpop.f32.mrb[4].mxu1  ;;  %v694_v20 = vld [vmem:[%s2864_s5 + $0x20] sm:$0xff]  ;;  %v695_v21 = vld [vmem:[%s2864_s5 + $0x28] sm:$0xff] }
 0x16f   :  { %v396_v25 = vpop.f32.mrb[5].mxu1 }
 0x170   :  { %445 = vst.msk [vmem:[#allocation2 + $0x9] sm:$0xff] %vm423_vm1, %v2475_v22  ;;  %v1419_v26 = vpop.f32.mrb[6].mxu0  ;;  %v282_v27 = vadd.f32 %v1418_v23, %v1353_v8  ;;  %v1689_v23 = vpack.c.bf16 %v695_v21, %v694_v20 }
 0x171   :  { %v1420_v28 = vpop.f32.mrb[7].mxu0 }
 0x172   :  { %v1421_v29 = vadd.f32 %v1420_v28, %v1419_v26  ;;  %v2479_v30 = vadd.f32 %v386_v18, %v282_v27  ;;  %v1527_v31 = vpop.f32.mrb[6].mxu1  ;;  %v693_v18 = vld [vmem:[%s2864_s5 + $0x18] sm:$0xff]  ;;  %v698_v27 = vld [vmem:[%s2864_s5 + $0x40] sm:$0xff]  ;;  %v699_v28 = vld [vmem:[%s2864_s5 + $0x48] sm:$0xff] }
 0x173   :  { %v406_v33 = vpop.f32.mrb[7].mxu1  ;;  %v1686_v19 = vpack.c.bf16 %v693_v18, %v692_v15 }
 0x174   :  { %v287_v34 = vadd.f32 %v1421_v29, %v1353_v8  ;;  %446 = vst.msk [vmem:[#allocation2 + $0x11] sm:$0xff] %vm423_vm1, %v2479_v30  ;;  %v1422_v35 = vpop.f32.mrb[8].mxu0  ;;  %v1695_v29 = vpack.c.bf16 %v699_v28, %v698_v27  ;;  %v856_v28 = vld [vmem:[#allocation7] sm:$0xff] }
 0x175   :  { %v1423_v37 = vpop.f32.mrb[9].mxu0 }
 0x176   :  { %v2483_v38 = vadd.f32 %v1521_v17, %v287_v34  ;;  %v1424_v39 = vadd.f32 %v1423_v37, %v1422_v35  ;;  %v1683_v17 = vpack.c.bf16 %v691_v14, %v690_v13  ;;  %v702_v35 = vld [vmem:[%s2864_s5 + $0x60] sm:$0xff]  ;;  %v703_v37 = vld [vmem:[%s2864_s5 + $0x68] sm:$0xff] }
 0x177   :  { %v462_v40 = vld [vmem:[#allocation2 + $0x2] ss:$2 sm:$0xff]  ;;  %v458_v41 = vld [vmem:[#allocation2 + $0x1] ss:$2 sm:$0xff] }
 0x178   :  { %447 = vst.msk [vmem:[#allocation2 + $0x19] sm:$0xff] %vm423_vm1, %v2483_v38  ;;  %v1425_v42 = vpop.f32.mrb[10].mxu0  ;;  %1357 = vmatprep.mubr.msk.f32.mxu0 %vm423_vm1, %v462_v40  ;;  %467 = vrot.lane.b32.xlu0 %v458_v41, %s1988_s2  ;;  %v292_v43 = vadd.f32 %v1424_v39, %v1353_v8  ;;  %v454_v63 = vld [vmem:[#allocation2] ss:$2 sm:$0xff]  ;;  %v1701_v39 = vpack.c.bf16 %v703_v37, %v702_v35  ;;  %v704_v40 = vld [vmem:[%s2864_s5 + $0x70] sm:$0xff]  ;;  %v705_v41 = vld [vmem:[%s2864_s5 + $0x78] sm:$0xff] }
 0x179   :  { %v1426_v44 = vpop.f32.mrb[11].mxu0  ;;  %1684 = vmatpush1.bf16.msra.mxu1 %v1683_v17  ;;  %v860_v37 = vld [vmem:[#allocation7 + $0x20] sm:$0xff] }
 0x17a   :  { %v1427_v45 = vadd.f32 %v1426_v44, %v1425_v42  ;;  %v2489_v46 = vadd.f32 %v396_v25, %v292_v43  ;;  %1685 = vmatprep.subr.bf16.mxu1 %v1987_v36  ;;  %v697_v25 = vld [vmem:[%s2864_s5 + $0x38] sm:$0xff]  ;;  %v1704_v42 = vpack.c.bf16 %v705_v41, %v704_v40  ;;  %v706_v43 = vld [vmem:[%s2864_s5 + $0x80] sm:$0xff]  ;;  %v707_v44 = vld [vmem:[%s2864_s5 + $0x88] sm:$0xff] }
 0x17b   :  { %v862_v41 = vld [vmem:[#allocation7 + $0x30] sm:$0xff] }
 0x17c   :  { %v297_v47 = vadd.f32 %v1427_v45, %v1353_v8  ;;  %450 = vst.msk [vmem:[#allocation2 + $0x23] sm:$0xff] %vm423_vm1, %v2489_v46  ;;  %v1428_v48 = vpop.f32.mrb[12].mxu0  ;;  %v1707_v45 = vpack.c.bf16 %v707_v44, %v706_v43  ;;  %v864_v44 = vld [vmem:[#allocation7 + $0x40] sm:$0xff] }
 0x17d   :  { %v1429_v49 = vpop.f32.mrb[13].mxu0  ;;  %1687 = vmatpush1.bf16.msra.mxu1 %v1686_v19 }
 0x17e   :  { %v2493_v50 = vadd.f32 %v1524_v24, %v297_v47  ;;  %v1430_v51 = vadd.f32 %v1429_v49, %v1428_v48  ;;  %1688 = vmatprep.subr.bf16.mxu1 %v1987_v36  ;;  %v696_v24 = vld [vmem:[%s2864_s5 + $0x30] sm:$0xff]  ;;  %v709_v48 = vld [vmem:[%s2864_s5 + $0x98] sm:$0xff] }
 0x17f   :  { %v460_v52 = vld [vmem:[#allocation2 + $0x11] ss:$2 sm:$0xff]  ;;  %v464_v1 = vld [vmem:[#allocation2 + $0x12] ss:$2 sm:$0xff]  ;;  %v1692_v26 = vpack.c.bf16 %v697_v25, %v696_v24 }
 0x180   :  { %451 = vst.msk [vmem:[#allocation2 + $0x2b] sm:$0xff] %vm423_vm1, %v2493_v50  ;;  %v1431_v53 = vpop.f32.mrb[14].mxu0  ;;  %469 = vrot.lane.b32.xlu0 %v460_v52, %s1988_s2  ;;  %v302_v54 = vadd.f32 %v1430_v51, %v1353_v8  ;;  %v456_v3 = vld [vmem:[#allocation2 + $0x10] ss:$2 sm:$0xff]  ;;  %v710_v51 = vld [vmem:[%s2864_s5 + $0xa0] sm:$0xff]  ;;  %v711_v52 = vld [vmem:[%s2864_s5 + $0xa8] sm:$0xff] }
 0x181   :  { %v1432_v55 = vpop.f32.mrb[15].mxu0  ;;  %1690 = vmatpush1.bf16.msra.mxu1 %v1689_v23  ;;  %v708_v47 = vld [vmem:[%s2864_s5 + $0x90] sm:$0xff] }
 0x182   :  { %v1433_v56 = vadd.f32 %v1432_v55, %v1431_v53  ;;  %v2498_v57 = vadd.f32 %v406_v33, %v302_v54  ;;  %1691 = vmatprep.subr.bf16.mxu1 %v1987_v36  ;;  %v701_v33 = vld [vmem:[%s2864_s5 + $0x58] sm:$0xff]  ;;  %v1710_v49 = vpack.c.bf16 %v709_v48, %v708_v47  ;;  %v1713_v53 = vpack.c.bf16 %v711_v52, %v710_v51  ;;  %v712_v54 = vld [vmem:[%s2864_s5 + $0xb0] sm:$0xff] }
 0x183   :  { %v713_v55 = vld [vmem:[%s2864_s5 + $0xb8] sm:$0xff]  ;;  %v866_v48 = vld [vmem:[#allocation7 + $0x50] sm:$0xff] }
 0x184   :  { %v307_v58 = vadd.f32 %v1433_v56, %v1353_v8  ;;  %452 = vst.msk [vmem:[#allocation2 + $0x33] sm:$0xff] %vm423_vm1, %v2498_v57  ;;  %v1716_v56 = vpack.c.bf16 %v713_v55, %v712_v54  ;;  %v868_v52 = vld [vmem:[#allocation7 + $0x60] sm:$0xff] }
 0x185   :  { %1693 = vmatpush1.bf16.msra.mxu1 %v1692_v26  ;;  %v1363_v55 = vld [vmem:[%s2865_s6] ss:$0 sm:$0xff] }
 0x186   :  { %v2502_v59 = vadd.f32 %v1527_v31, %v307_v58  ;;  %1694 = vmatprep.subr.bf16.mxu1 %v1987_v36  ;;  %v700_v31 = vld [vmem:[%s2864_s5 + $0x50] sm:$0xff]  ;;  %v1356_v58 = vld [vmem:[%s2863_s4] ss:$0 sm:$0xff] }
 0x187   :  { %v480_v60 = vld [vmem:[#allocation2 + $0x23] ss:$2 sm:$0xff]  ;;  %v484_v5 = vld [vmem:[#allocation2 + $0x24] ss:$2 sm:$0xff]  ;;  %v1698_v34 = vpack.c.bf16 %v701_v33, %v700_v31 }
 0x188   :  { %453 = vst.msk [vmem:[#allocation2 + $0x3b] sm:$0xff] %vm423_vm1, %v2502_v59  ;;  %489 = vrot.lane.b32.xlu1 %v480_v60, %s1988_s2  ;;  %v476_v7 = vld [vmem:[#allocation2 + $0x22] ss:$2 sm:$0xff] }
 0x189   :  { %1696 = vmatpush1.bf16.msra.mxu1 %v1695_v29  ;;  %v857_v29 = vld [vmem:[#allocation7 + $0x8] sm:$0xff]  ;;  %v858_v31 = vld [vmem:[#allocation7 + $0x10] sm:$0xff] }
 0x18a   :  { %1697 = vmatprep.subr.bf16.mxu1 %v1987_v36  ;;  %v1719_v33 = vpack.c.bf16 %v857_v29, %v856_v28 }
 0x18d   :  { %1699 = vmatpush1.bf16.msra.mxu1 %v1698_v34  ;;  %v859_v34 = vld [vmem:[#allocation7 + $0x18] sm:$0xff] }
 0x18e   :  { %1700 = vmatprep.subr.bf16.mxu1 %v1987_v36  ;;  %v1722_v35 = vpack.c.bf16 %v859_v34, %v858_v31 }
 0x18f   :  { %v482_v61 = vld [vmem:[#allocation2 + $0x33] ss:$2 sm:$0xff]  ;;  %v486_v9 = vld [vmem:[#allocation2 + $0x34] ss:$2 sm:$0xff] }
 0x190   :  { %491 = vrot.lane.b32.xlu1 %v482_v61, %s1988_s2  ;;  %v478_v11 = vld [vmem:[#allocation2 + $0x32] ss:$2 sm:$0xff] }
 0x191   :  { %1702 = vmatpush1.bf16.msra.mxu1 %v1701_v39  ;;  %v861_v39 = vld [vmem:[#allocation7 + $0x28] sm:$0xff] }
 0x192   :  { %1703 = vmatprep.subr.bf16.mxu1 %v1987_v36  ;;  %v1725_v40 = vpack.c.bf16 %v861_v39, %v860_v37 }
 0x195   :  { %1705 = vmatpush1.bf16.msra.mxu1 %v1704_v42  ;;  %v863_v42 = vld [vmem:[#allocation7 + $0x38] sm:$0xff] }
 0x196   :  { %1706 = vmatprep.subr.bf16.mxu1 %v1987_v36  ;;  %v1728_v43 = vpack.c.bf16 %v863_v42, %v862_v41 }
 0x199   :  { %1708 = vmatpush1.bf16.msra.mxu1 %v1707_v45  ;;  %v865_v45 = vld [vmem:[#allocation7 + $0x48] sm:$0xff] }
 0x19a   :  { %1709 = vmatprep.subr.bf16.mxu1 %v1987_v36  ;;  %v1731_v47 = vpack.c.bf16 %v865_v45, %v864_v44 }
 0x19d   :  { %1711 = vmatpush1.bf16.msra.mxu1 %v1710_v49  ;;  %v867_v49 = vld [vmem:[#allocation7 + $0x58] sm:$0xff] }
 0x19e   :  { %1712 = vmatprep.subr.bf16.mxu1 %v1987_v36  ;;  %v1734_v51 = vpack.c.bf16 %v867_v49, %v866_v48  ;;  %v1008_v48 = vld [vmem:[#allocation9] sm:$0xff]  ;;  %v1009_v49 = vld [vmem:[#allocation9 + $0x8] sm:$0xff] }
 0x1a1   :  { %1714 = vmatpush1.bf16.msra.mxu1 %v1713_v53  ;;  %v869_v53 = vld [vmem:[#allocation7 + $0x68] sm:$0xff] }
 0x1a2   :  { %1715 = vmatprep.subr.bf16.mxu1 %v1987_v36  ;;  %v1737_v54 = vpack.c.bf16 %v869_v53, %v868_v52  ;;  %v1755_v52 = vpack.c.bf16 %v1009_v49, %v1008_v48  ;;  %v1011_v53 = vld [vmem:[#allocation9 + $0x18] sm:$0xff] }
 0x1a5   :  { %1717 = vmatpush1.bf16.msra.mxu1 %v1716_v56 }
 0x1a6   :  { %1754 = vmatprep.subr.bf16.mxu1 %v1987_v36 }
 0x1ea   :  { %v468_v62 = vpop.permute.xlu0 %467 }
 0x1eb   :  { %v473_v0 = vsel %vm423_vm1, %v454_v63, %v468_v62 }
 0x1ec   :  { %605 = vmatmul.mubr.f32.vlgmr.msra.gmra.mrb[16].mxu0 %v473_v0 }
 0x1ed   :  { %1358 = vmatprep.mubr.msk.f32.mxu0 %vm423_vm1, %v464_v1  ;;  %1720 = vmatpush1.bf16.msra.mxu0 %v1719_v33 }
 0x1ee   :  { %1721 = vmatprep.subr.bf16.mxu0 %v1987_v36 }
 0x1f1   :  { %1723 = vmatpush1.bf16.msra.mxu0 %v1722_v35 }
 0x1f2   :  { %v470_v2 = vpop.permute.xlu0 %469  ;;  %1724 = vmatprep.subr.bf16.mxu0 %v1987_v36 }
 0x1f3   :  { %v474_v4 = vsel %vm423_vm1, %v456_v3, %v470_v2 }
 0x1f4   :  { %610 = vmatmul.mubr.f32.gmra.mrb[18].mxu0 %v474_v4 }
 0x1f5   :  { %1359 = vmatprep.mubr.msk.f32.mxu0 %vm423_vm1, %v484_v5  ;;  %1726 = vmatpush1.bf16.msra.mxu0 %v1725_v40 }
 0x1f6   :  { %1727 = vmatprep.subr.bf16.mxu0 %v1987_v36 }
 0x1f9   :  { %1729 = vmatpush1.bf16.msra.mxu0 %v1728_v43 }
 0x1fa   :  { %v490_v6 = vpop.permute.xlu1 %489  ;;  %1730 = vmatprep.subr.bf16.mxu0 %v1987_v36 }
 0x1fb   :  { %v495_v8 = vsel %vm423_vm1, %v476_v7, %v490_v6 }
 0x1fc   :  { %615 = vmatmul.mubr.f32.gmra.mrb[20].mxu0 %v495_v8 }
 0x1fd   :  { %1360 = vmatprep.mubr.msk.f32.mxu0 %vm423_vm1, %v486_v9  ;;  %1732 = vmatpush1.bf16.msra.mxu0 %v1731_v47 }
 0x1fe   :  { %1733 = vmatprep.subr.bf16.mxu0 %v1987_v36 }
 0x201   :  { %1735 = vmatpush1.bf16.msra.mxu0 %v1734_v51  ;;  %v1010_v51 = vld [vmem:[#allocation9 + $0x10] sm:$0xff] }
 0x202   :  { %v492_v10 = vpop.permute.xlu1 %491  ;;  %1736 = vmatprep.subr.bf16.mxu0 %v1987_v36 }
 0x203   :  { %v496_v12 = vsel %vm423_vm1, %v478_v11, %v492_v10 }
 0x204   :  { %620 = vmatmul.mubr.f32.gmra.mrb[22].mxu0 %v496_v12 }
 0x205   :  { %1738 = vmatpush1.bf16.msra.mxu0 %v1737_v54  ;;  %v1758_v54 = vpack.c.bf16 %v1011_v53, %v1010_v51 }
 0x206   :  { %1739 = vmatprep.subr.bf16.mxu0 %v1987_v36 }
 0x2bf   :  { %v606_v60 = vpop.f32.mrb[16].mxu0 }
 0x2c0   :  { %v2602_v61 = vadd.f32 %v1356_v58, %v606_v60  ;;  %v608_v62 = vpop.f32.mrb[17].mxu0  ;;  %v871_v60 = vld [vmem:[#allocation7 + $0x78] sm:$0xff] }
 0x2c2   :  { %vm625_vm2 = vcmp.ge.f32.partialorder %v2602_v61, 0.0  ;;  %v629_v63 = vmul.f32 0.2, %v2602_v61 }
 0x2c4   :  { %v2607_v0 = vsel %vm625_vm2, %v2602_v61, %v629_v63  ;;  %vm1146_vm2 = vcmask 1040384  }
 0x2c5   :  { %663 = vst.msk [vmem:[#allocation3 + $0x1] sm:$0xff] %vm423_vm1, %v2607_v0 }
 0x2c7   :  { %v611_v1 = vpop.f32.mrb[18].mxu0 }
 0x2c8   :  { %v2611_v2 = vadd.f32 %v1356_v58, %v611_v1  ;;  %v613_v3 = vpop.f32.mrb[19].mxu0 }
 0x2c9   :  { %v872_v3 = vld [vmem:[#allocation7 + $0x80] sm:$0xff] }
 0x2ca   :  { %vm626_vm3 = vcmp.ge.f32.partialorder %v2611_v2, 0.0  ;;  %v630_v4 = vmul.f32 0.2, %v2611_v2 }
 0x2cc   :  { %v2616_v5 = vsel %vm626_vm3, %v2611_v2, %v630_v4  ;;  %v873_v4 = vld [vmem:[#allocation7 + $0x88] sm:$0xff] }
 0x2cd   :  { %664 = vst.msk [vmem:[#allocation3 + $0x9] sm:$0xff] %vm423_vm1, %v2616_v5 }
 0x2cf   :  { %v616_v6 = vpop.f32.mrb[20].mxu0 }
 0x2d0   :  { %v2620_v7 = vadd.f32 %v1356_v58, %v616_v6  ;;  %v618_v8 = vpop.f32.mrb[21].mxu0 }
 0x2d1   :  { %v1743_v8 = vpack.c.bf16 %v873_v4, %v872_v3  ;;  %v1016_v3 = vld [vmem:[#allocation9 + $0x40] sm:$0xff]  ;;  %v1017_v4 = vld [vmem:[#allocation9 + $0x48] sm:$0xff] }
 0x2d2   :  { %vm627_vm4 = vcmp.ge.f32.partialorder %v2620_v7, 0.0  ;;  %v631_v9 = vmul.f32 0.2, %v2620_v7 }
 0x2d4   :  { %v2625_v10 = vsel %vm627_vm4, %v2620_v7, %v631_v9  ;;  %v673_v11 = vld [vmem:[#allocation3 + $0x2] ss:$2 sm:$0xff]  ;;  %v671_v12 = vld [vmem:[#allocation3 + $0x1] ss:$2 sm:$0xff] }
 0x2d5   :  { %667 = vst.msk [vmem:[#allocation3 + $0x13] sm:$0xff] %vm423_vm1, %v2625_v10  ;;  %1364 = vmatprep.mubr.msk.f32.mxu1 %vm423_vm1, %v673_v11  ;;  %675 = vrot.lane.b32.xlu0 %v671_v12, %s1988_s2  ;;  %v669_v21 = vld [vmem:[#allocation3] ss:$2 sm:$0xff] }
 0x2d6   :  { %v874_v9 = vld [vmem:[#allocation7 + $0x90] sm:$0xff]  ;;  %v875_v11 = vld [vmem:[#allocation7 + $0x98] sm:$0xff] }
 0x2d7   :  { %v621_v13 = vpop.f32.mrb[22].mxu0 }
 0x2d8   :  { %v2631_v14 = vadd.f32 %v1356_v58, %v621_v13  ;;  %v623_v15 = vpop.f32.mrb[23].mxu0  ;;  %v870_v58 = vld [vmem:[#allocation7 + $0x70] sm:$0xff]  ;;  %v1746_v13 = vpack.c.bf16 %v875_v11, %v874_v9  ;;  %v1019_v9 = vld [vmem:[#allocation9 + $0x58] sm:$0xff] }
 0x2d9   :  { %v1740_v1 = vpack.c.bf16 %v871_v60, %v870_v58  ;;  %v876_v15 = vld [vmem:[#allocation7 + $0xa0] sm:$0xff]  ;;  %v1014_v60 = vld [vmem:[#allocation9 + $0x30] sm:$0xff] }
 0x2da   :  { %vm628_vm5 = vcmp.ge.f32.partialorder %v2631_v14, 0.0  ;;  %v632_v17 = vmul.f32 0.2, %v2631_v14 }
 0x2db   :  { %1741 = vmatpush1.bf16.msra.mxu0 %v1740_v1 }
 0x2dc   :  { %v2636_v18 = vsel %vm628_vm5, %v2631_v14, %v632_v17  ;;  %1742 = vmatprep.subr.bf16.mxu0 %v1987_v36  ;;  %v877_v17 = vld [vmem:[#allocation7 + $0xa8] sm:$0xff] }
 0x2dd   :  { %668 = vst.msk [vmem:[#allocation3 + $0x1b] sm:$0xff] %vm423_vm1, %v2636_v18 }
 0x2df   :  { %1744 = vmatpush1.bf16.msra.mxu0 %v1743_v8  ;;  %v1018_v8 = vld [vmem:[#allocation9 + $0x50] sm:$0xff] }
 0x2e0   :  { %1745 = vmatprep.subr.bf16.mxu0 %v1987_v36  ;;  %v1770_v11 = vpack.c.bf16 %v1019_v9, %v1018_v8  ;;  %v1149_v8 = vld [vmem:[#allocation12 + $0x8] sm:$0xff]  ;;  %v1150_v9 = vld [vmem:[#allocation12 + $0x10] sm:$0xff] }
 0x2e3   :  { %1747 = vmatpush1.bf16.msra.mxu0 %v1746_v13  ;;  %v1020_v13 = vld [vmem:[#allocation9 + $0x60] sm:$0xff] }
 0x2e4   :  { %v682_v19 = vld [vmem:[#allocation3 + $0x13] ss:$2 sm:$0xff]  ;;  %v684_v24 = vld [vmem:[#allocation3 + $0x14] ss:$2 sm:$0xff]  ;;  %1748 = vmatprep.subr.bf16.mxu0 %v1987_v36 }
 0x2e5   :  { %686 = vrot.lane.b32.xlu1 %v682_v19, %s1988_s2  ;;  %v680_v26 = vld [vmem:[#allocation3 + $0x12] ss:$2 sm:$0xff]  ;;  %v1749_v19 = vpack.c.bf16 %v877_v17, %v876_v15 }
 0x2e6   :  { %v1021_v15 = vld [vmem:[#allocation9 + $0x68] sm:$0xff] }
 0x2e7   :  { %1750 = vmatpush1.bf16.msra.mxu0 %v1749_v19  ;;  %v1773_v17 = vpack.c.bf16 %v1021_v15, %v1020_v13  ;;  %v1022_v19 = vld [vmem:[#allocation9 + $0x70] sm:$0xff]  ;;  %v1151_v13 = vld [vmem:[#allocation12 + $0x18] sm:$0xff] }
 0x2e8   :  { %1751 = vmatprep.subr.bf16.mxu0 %v1987_v36  ;;  %v1794_v15 = vpack.c.bf16 %v1151_v13, %v1150_v9 }
 0x347   :  { %v676_v20 = vpop.permute.xlu0 %675 }
 0x348   :  { %v678_v23 = vsel %vm423_vm1, %v669_v21, %v676_v20 }
 0x349   :  { %792 = vmatmul.mubr.f32.vlgmr.msra.gmra.mrb[8].mxu1 %v678_v23  ;;  %v878_v23 = vld [vmem:[#allocation7 + $0xb0] sm:$0xff] }
 0x34a   :  { %1365 = vmatprep.mubr.msk.f32.mxu1 %vm423_vm1, %v684_v24  ;;  %v879_v24 = vld [vmem:[#allocation7 + $0xb8] sm:$0xff]  ;;  %1756 = vmatpush1.bf16.msra.mxu1 %v1755_v52 }
 0x34b   :  { %1757 = vmatprep.subr.bf16.mxu1 %v1987_v36 }
 0x34e   :  { %1759 = vmatpush1.bf16.msra.mxu1 %v1758_v54 }
 0x34f   :  { %1760 = vmatprep.subr.bf16.mxu1 %v1987_v36 }
 0x357   :  { %v687_v25 = vpop.permute.xlu1 %686 }
 0x358   :  { %v689_v27 = vsel %vm423_vm1, %v680_v26, %v687_v25 }
 0x359   :  { %797 = vmatmul.mubr.f32.gmra.mrb[10].mxu1 %v689_v27  ;;  %v1752_v27 = vpack.c.bf16 %v879_v24, %v878_v23  ;;  %v1024_v23 = vld [vmem:[#allocation9 + $0x80] sm:$0xff]  ;;  %v1025_v24 = vld [vmem:[#allocation9 + $0x88] sm:$0xff] }
 0x35b   :  { %1753 = vmatpush1.bf16.msra.mxu0 %v1752_v27  ;;  %v1026_v27 = vld [vmem:[#allocation9 + $0x90] sm:$0xff] }
 0x35c   :  { %1790 = vmatprep.subr.bf16.mxu0 %v1987_v36 }
 0x41c   :  { %v793_v56 = vpop.f32.mrb[8].mxu1 }
 0x41d   :  { %v2654_v62 = vadd.f32 %v1363_v55, %v793_v56  ;;  %v795_v63 = vpop.f32.mrb[9].mxu1  ;;  %v1013_v56 = vld [vmem:[#allocation9 + $0x28] sm:$0xff] }
 0x41e   :  { %v1015_v63 = vld [vmem:[#allocation9 + $0x38] sm:$0xff] }
 0x41f   :  { %vm802_vm6 = vcmp.ge.f32.partialorder %v2654_v62, 0.0  ;;  %v804_v6 = vmul.f32 0.2, %v2654_v62  ;;  %v1764_v1 = vpack.c.bf16 %v1015_v63, %v1014_v60 }
 0x421   :  { %v2660_v12 = vsel %vm802_vm6, %v2654_v62, %v804_v6  ;;  %v1767_v6 = vpack.c.bf16 %v1017_v4, %v1016_v3 }
 0x422   :  { %822 = vst.msk [vmem:[#allocation4 + $0x1] sm:$0xff] %vm423_vm1, %v2660_v12 }
 0x429   :  { %v828_v20 = vld [vmem:[#allocation4 + $0x1] ss:$2 sm:$0xf]  ;;  %v830_v35 = vld [vmem:[#allocation4 + $0x2] ss:$2 sm:$0xf] }
 0x42a   :  { %832 = vrot.lane.b32.xlu1 %v828_v20, %s1988_s2  ;;  %v826_v43 = vld [vmem:[#allocation4] ss:$2 sm:$0xf] }
 0x42b   :  { %v1023_v20 = vld [vmem:[#allocation9 + $0x78] sm:$0xff] }
 0x42c   :  { %v798_v21 = vpop.f32.mrb[10].mxu1 }
 0x42d   :  { %v2668_v25 = vadd.f32 %v1363_v55, %v798_v21  ;;  %v800_v26 = vpop.f32.mrb[11].mxu1  ;;  %v1012_v55 = vld [vmem:[#allocation9 + $0x20] sm:$0xff]  ;;  %v1776_v21 = vpack.c.bf16 %v1023_v20, %v1022_v19  ;;  %v1153_v19 = vld [vmem:[#allocation12 + $0x28] sm:$0xff] }
 0x42e   :  { %v1761_v58 = vpack.c.bf16 %v1013_v56, %v1012_v55  ;;  %v1779_v26 = vpack.c.bf16 %v1025_v24, %v1024_v23  ;;  %v1155_v23 = vld [vmem:[#allocation12 + $0x38] sm:$0xff] }
 0x42f   :  { %vm803_vm7 = vcmp.ge.f32.partialorder %v2668_v25, 0.0  ;;  %v805_v28 = vmul.f32 0.2, %v2668_v25 }
 0x430   :  { %1762 = vmatpush1.bf16.msra.mxu1 %v1761_v58 }
 0x431   :  { %v2674_v29 = vsel %vm803_vm7, %v2668_v25, %v805_v28  ;;  %1763 = vmatprep.subr.bf16.mxu1 %v1987_v36  ;;  %v1027_v28 = vld [vmem:[#allocation9 + $0x98] sm:$0xff] }
 0x432   :  { %825 = vst.msk [vmem:[#allocation4 + $0xb] sm:$0xff] %vm423_vm1, %v2674_v29 }
 0x434   :  { %1765 = vmatpush1.bf16.msra.mxu1 %v1764_v1 }
 0x435   :  { %1766 = vmatprep.subr.bf16.mxu1 %v1987_v36 }
 0x438   :  { %1768 = vmatpush1.bf16.msra.mxu1 %v1767_v6  ;;  %v1148_v6 = vld [vmem:[#allocation12] sm:$0xff] }
 0x439   :  { %v839_v31 = vld [vmem:[#allocation4 + $0xb] ss:$2 sm:$0xf]  ;;  %v841_v33 = vld [vmem:[#allocation4 + $0xc] ss:$2 sm:$0xf]  ;;  %1769 = vmatprep.subr.bf16.mxu1 %v1987_v36 }
 0x43a   :  { %843 = vrot.lane.b32.xlu0 %v839_v31, %s1988_s2  ;;  %v850_v34 = vrot.slane %v841_v33, 4  ;;  %v837_v41 = vld [vmem:[#allocation4 + $0xa] ss:$2 sm:$0xf]  ;;  %v1782_v31 = vpack.c.bf16 %v1027_v28, %v1026_v27  ;;  %v1157_v27 = vld [vmem:[#allocation12 + $0x48] sm:$0xff] }
 0x43b   :  { %v1028_v33 = vld [vmem:[#allocation9 + $0xa0] sm:$0xff] }
 0x43c   :  { %v855_v37 = vsel %vm853_vm8, %v830_v35, %v850_v34  ;;  %1771 = vmatpush1.bf16.msra.mxu1 %v1770_v11  ;;  %v1029_v34 = vld [vmem:[#allocation9 + $0xa8] sm:$0xff]  ;;  %v1791_v11 = vpack.c.bf16 %v1149_v8, %v1148_v6 }
 0x43d   :  { %1368 = vmatprep.mubr.msk.f32.mxu0 %vm423_vm1, %v855_v37  ;;  %1772 = vmatprep.subr.bf16.mxu1 %v1987_v36  ;;  %v1785_v35 = vpack.c.bf16 %v1029_v34, %v1028_v33  ;;  %v1367_v37 = vld [vmem:[%s2867_s8] ss:$0 sm:$0xff]  ;;  %v1159_v33 = vld [vmem:[#allocation12 + $0x58] sm:$0xff] }
 0x440   :  { %1774 = vmatpush1.bf16.msra.mxu1 %v1773_v17  ;;  %v1152_v17 = vld [vmem:[#allocation12 + $0x20] sm:$0xff] }
 0x441   :  { %1775 = vmatprep.subr.bf16.mxu1 %v1987_v36  ;;  %v1797_v20 = vpack.c.bf16 %v1153_v19, %v1152_v17 }
 0x444   :  { %1777 = vmatpush1.bf16.msra.mxu1 %v1776_v21  ;;  %v1154_v21 = vld [vmem:[#allocation12 + $0x30] sm:$0xff] }
 0x445   :  { %1778 = vmatprep.subr.bf16.mxu1 %v1987_v36  ;;  %v1800_v24 = vpack.c.bf16 %v1155_v23, %v1154_v21 }
 0x448   :  { %1780 = vmatpush1.bf16.msra.mxu1 %v1779_v26  ;;  %v1156_v26 = vld [vmem:[#allocation12 + $0x40] sm:$0xff] }
 0x449   :  { %1781 = vmatprep.subr.bf16.mxu1 %v1987_v36  ;;  %v1803_v28 = vpack.c.bf16 %v1157_v27, %v1156_v26  ;;  %v1373_v26 = vld [vmem:[#allocation14] ss:$0 sm:$0xff] }
 0x44c   :  { %1783 = vmatpush1.bf16.msra.mxu1 %v1782_v31  ;;  %v1158_v31 = vld [vmem:[#allocation12 + $0x50] sm:$0xff] }
 0x44d   :  { %1784 = vmatprep.subr.bf16.mxu1 %v1987_v36  ;;  %v1806_v34 = vpack.c.bf16 %v1159_v33, %v1158_v31 }
 0x450   :  { %1786 = vmatpush1.bf16.msra.mxu1 %v1785_v35  ;;  %v1160_v35 = vld [vmem:[#allocation12 + $0x60] sm:$0xff] }
 0x451   :  { %1787 = vmatprep.subr.bf16.mxu1 %v1987_v36 }
 0x49c   :  { %v833_v39 = vpop.permute.xlu1 %832 }
 0x49d   :  { %v835_v45 = vsel %vm423_vm1, %v826_v43, %v833_v39  ;;  %v1031_v43 = vld [vmem:[#allocation9 + $0xb8] sm:$0xff] }
 0x4ac   :  { %v844_v40 = vpop.permute.xlu0 %843 }
 0x4ad   :  { %v846_v42 = vsel %vm423_vm1, %v837_v41, %v844_v40 }
 0x4ae   :  { %v849_v44 = vrot.slane %v846_v42, 4  ;;  %v1030_v42 = vld [vmem:[#allocation9 + $0xb0] sm:$0xff] }
 0x4b0   :  { %v854_v47 = vsel %vm853_vm8, %v835_v45, %v849_v44  ;;  %v1788_v45 = vpack.c.bf16 %v1031_v43, %v1030_v42 }
 0x4b1   :  { %955 = vmatmul.mubr.f32.vlgmr.msra.gmra.mrb[24].mxu0 %v854_v47 }
 0x4b2   :  { %1789 = vmatpush1.bf16.msra.mxu1 %v1788_v45  ;;  %1792 = vmatpush3.bf16.msra.mxu0 %v1791_v11  ;;  %v1162_v45 = vld [vmem:[#allocation12 + $0x70] sm:$0xff] }
 0x4b3   :  { %1814 = vmatprep.subr.bf16.mxu1 %v1987_v36  ;;  %1793 = vmatprep.subr.bf16.mxu0 %v1987_v36 }
 0x4b4   :  { %1560 = vmatprep.mubr.msk.f32.mxu0 %vm1989_vm0, %v1986_v32 }
 0x4b6   :  { %1795 = vmatpush3.bf16.msra.mxu0 %v1794_v15 }
 0x4b7   :  { %1796 = vmatprep.subr.bf16.mxu0 %v1987_v36 }
 0x4ba   :  { %1798 = vmatpush3.bf16.msra.mxu0 %v1797_v20 }
 0x4bb   :  { %1799 = vmatprep.subr.bf16.mxu0 %v1987_v36 }
 0x4be   :  { %1801 = vmatpush3.bf16.msra.mxu0 %v1800_v24 }
 0x4bf   :  { %1802 = vmatprep.subr.bf16.mxu0 %v1987_v36 }
 0x4c2   :  { %1804 = vmatpush3.bf16.msra.mxu0 %v1803_v28 }
 0x4c3   :  { %1805 = vmatprep.subr.bf16.mxu0 %v1987_v36 }
 0x4c6   :  { %1807 = vmatpush3.bf16.msra.mxu0 %v1806_v34 }
 0x4c7   :  { %1808 = vmatprep.subr.bf16.mxu0 %v1987_v36 }
 0x584   :  { %v956_v39 = vpop.f32.mrb[24].mxu0 }
 0x585   :  { %v2696_v40 = vadd.f32 %v1367_v37, %v956_v39  ;;  %v958_v41 = vpop.f32.mrb[25].mxu0  ;;  %v1161_v37 = vld [vmem:[#allocation12 + $0x68] sm:$0xff] }
 0x586   :  { %v1809_v39 = vpack.c.bf16 %v1161_v37, %v1160_v35  ;;  %v1370_v41 = vld [vmem:[#allocation11] ss:$0 sm:$0xff] }
 0x587   :  { %vm960_vm10 = vcmp.ge.f32.partialorder %v2696_v40, 0.0  ;;  %v961_v44 = vmul.f32 0.2, %v2696_v40 }
 0x588   :  { %1810 = vmatpush3.bf16.msra.mxu0 %v1809_v39  ;;  %v1375_v39 = vld [vmem:[#allocation15] ss:$0 sm:$0xff] }
 0x589   :  { %v2701_v47 = vsel %vm960_vm10, %v2696_v40, %v961_v44  ;;  %1811 = vmatprep.subr.bf16.mxu0 %v1987_v36 }
 0x58a   :  { %973 = vst.msk [vmem:[#allocation5 + $0x1] sm:$0xf] %vm972_vm9, %v2701_v47 }
 0x58b   :  { %977 = vst.msk [vmem:[#allocation5 + $0x3] sm:$0xf0] %vm976_vm11, %v2701_v47 }
 0x591   :  { %v980_v49 = vld [vmem:[#allocation5 + $0x1] ss:$2 sm:$0x3]  ;;  %v982_v53 = vld [vmem:[#allocation5 + $0x2] ss:$2 sm:$0x3] }
 0x592   :  { %v991_v48 = vld [vmem:[#allocation5 + $0x7] ss:$2 sm:$0x3]  ;;  %984 = vrot.lane.b32.xlu1 %v980_v49, %s1988_s2  ;;  %v993_v51 = vld [vmem:[#allocation5 + $0x8] ss:$2 sm:$0x3] }
 0x593   :  { %995 = vrot.lane.b32.xlu0 %v991_v48, %s1988_s2  ;;  %v1002_v52 = vrot.slane %v993_v51, 6  ;;  %v989_v56 = vld [vmem:[#allocation5 + $0x6] ss:$2 sm:$0x3]  ;;  %v1163_v48 = vld [vmem:[#allocation12 + $0x78] sm:$0xff] }
 0x594   :  { %v978_v1 = vld [vmem:[#allocation5] ss:$2 sm:$0x3]  ;;  %v1812_v51 = vpack.c.bf16 %v1163_v48, %v1162_v45 }
 0x595   :  { %v1007_v54 = vsel %vm1005_vm12, %v982_v53, %v1002_v52 }
 0x596   :  { %1371 = vmatprep.mubr.msk.f32.mxu1 %vm423_vm1, %v1007_v54  ;;  %1813 = vmatpush3.bf16.msra.mxu0 %v1812_v51 }
 0x604   :  { %v985_v58 = vpop.permute.xlu1 %984 }
 0x605   :  { %v996_v55 = vpop.permute.xlu0 %995  ;;  %v987_v3 = vsel %vm423_vm1, %v978_v1, %v985_v58 }
 0x606   :  { %v998_v60 = vsel %vm423_vm1, %v989_v56, %v996_v55  ;;  %v1256_v55 = vld [vmem:[%s2872_s13 + $0x28] sm:$0xff] }
 0x607   :  { %v1001_v63 = vrot.slane %v998_v60, 6 }
 0x609   :  { %v1006_v4 = vsel %vm1005_vm12, %v987_v3, %v1001_v63 }
 0x60a   :  { %1107 = vmatmul.mubr.f32.vlgmr.msra.gmra.mrb[12].mxu1 %v1006_v4 }
 0x60b   :  { %1579 = vmatprep.mubr.msk.f32.mxu1 %vm1989_vm0, %v1986_v32  ;;  %v1251_v32 = vld [vmem:[%s2872_s13] sm:$0xff] }
 0x6dd   :  { %v1108_v42 = vpop.f32.mrb[12].mxu1 }
 0x6de   :  { %v2718_v43 = vadd.f32 %v1370_v41, %v1108_v42  ;;  %v1110_v44 = vpop.f32.mrb[13].mxu1 }
 0x6e0   :  { %vm1112_vm14 = vcmp.ge.f32.partialorder %v2718_v43, 0.0  ;;  %v1113_v49 = vmul.f32 0.2, %v2718_v43 }
 0x6e2   :  { %v1114_v52 = vsel %vm1112_vm14, %v2718_v43, %v1113_v49 }
 0x6e3   :  { %1123 = vst.msk [vmem:[#allocation6] sm:$0x3] %vm1122_vm13, %v1114_v52 }
 0x6e4   :  { %1125 = vst.msk [vmem:[#allocation6] sm:$0xc] %vm1124_vm15, %v1114_v52 }
 0x6ea   :  { %v1128_v54 = vld [vmem:[#allocation6 + $0x1] ss:$2 sm:$0x1]  ;;  %v1126_v63 = vld [vmem:[#allocation6] ss:$2 sm:$0x1] }
 0x6eb   :  { %v1137_v53 = vld [vmem:[#allocation6 + $0x3] ss:$2 sm:$0x1]  ;;  %1130 = vrot.lane.b32.xlu1 %v1128_v54, %s1988_s2 }
 0x6ec   :  { %1139 = vrot.lane.b32.xlu0 %v1137_v53, %s1988_s2 }
 0x6ef   :  { %419 = vrot.lane.b32.xlu1 %v2483_v38, %s1988_s2 }
 0x6f0   :  { %417 = vrot.lane.b32.xlu0 %v2479_v30, %s1988_s2  ;;  %v1252_v30 = vld [vmem:[%s2872_s13 + $0x8] sm:$0xff] }
 0x6f1   :  { %v1815_v38 = vpack.c.bf16 %v1252_v30, %v1251_v32 }
 0x6f3   :  { %432 = vrot.lane.b32.xlu1 %v2502_v59, %s1988_s2  ;;  %v1254_v59 = vld [vmem:[%s2872_s13 + $0x18] sm:$0xff]  ;;  %1816 = vmatpush3.bf16.msra.mxu1 %v1815_v38 }
 0x6f4   :  { %430 = vrot.lane.b32.xlu0 %v2498_v57, %s1988_s2  ;;  %v1253_v57 = vld [vmem:[%s2872_s13 + $0x10] sm:$0xff]  ;;  %1817 = vmatprep.subr.bf16.mxu1 %v1987_v36 }
 0x6f7   :  { %641 = vrot.lane.b32.xlu1 %v2616_v5, %s1988_s2  ;;  %v1255_v5 = vld [vmem:[%s2872_s13 + $0x20] sm:$0xff] }
 0x6f8   :  { %639 = vrot.lane.b32.xlu0 %v2607_v0, %s1988_s2  ;;  %v1818_v0 = vpack.c.bf16 %v1254_v59, %v1253_v57  ;;  %v1821_v56 = vpack.c.bf16 %v1256_v55, %v1255_v5 }
 0x6fa   :  { %1819 = vmatpush3.bf16.msra.mxu1 %v1818_v0 }
 0x6fb   :  { %653 = vrot.lane.b32.xlu1 %v2636_v18, %s1988_s2  ;;  %1820 = vmatprep.subr.bf16.mxu1 %v1987_v36  ;;  %v1135_v18 = vld [vmem:[#allocation6 + $0x2] ss:$2 sm:$0x1] }
 0x6fc   :  { %651 = vrot.lane.b32.xlu0 %v2625_v10, %s1988_s2 }
 0x6fe   :  { %1822 = vmatpush3.bf16.msra.mxu1 %v1821_v56 }
 0x6ff   :  { %815 = vrot.lane.b32.xlu1 %v2674_v29, %s1988_s2  ;;  %1823 = vmatprep.subr.bf16.mxu1 %v1987_v36 }
 0x700   :  { %809 = vrot.lane.b32.xlu0 %v2660_v12, %s1988_s2 }
 0x703   :  { %1116 = vrot.lane.b32.xlu1 %v1114_v52, %s1988_s2 }
 0x704   :  { %964 = vrot.lane.b32.xlu0 %v2701_v47, %s1988_s2 }
 0x75d   :  { %v1131_v58 = vpop.permute.xlu1 %1130 }
 0x75e   :  { %v1140_v10 = vpop.permute.xlu0 %1139  ;;  %v1133_v29 = vsel %vm423_vm1, %v1126_v63, %v1131_v58 }
 0x75f   :  { %v1142_v60 = vsel %vm423_vm1, %v1135_v18, %v1140_v10 }
 0x760   :  { %v1144_v12 = vrot.slane %v1142_v60, 7 }
 0x761   :  { %v420_v3 = vpop.permute.xlu1 %419 }
 0x762   :  { %v418_v1 = vpop.permute.xlu0 %417  ;;  %v1147_v4 = vsel %vm1146_vm2, %v1133_v29, %v1144_v12  ;;  %v425_v6 = vsel %vm423_vm1, %v2475_v22, %v420_v3 }
 0x763   :  { %v424_v47 = vsel %vm423_vm1, %v2471_v16, %v418_v1  ;;  %1561 = vmatmul.mubr.f32.vlgmr.msra.gmra.mrb[26].mxu0 %v1147_v4  ;;  %427 = vst [vmem:[%s2874_s15 + $0x8] sm:$0xff] %v425_v6 }
 0x764   :  { %426 = vst [vmem:[%s2874_s15] sm:$0xff] %v424_v47 }
 0x765   :  { %v433_v8 = vpop.permute.xlu1 %432 }
 0x766   :  { %v431_v36 = vpop.permute.xlu0 %430  ;;  %v437_v16 = vsel %vm423_vm1, %v2493_v50, %v433_v8 }
 0x767   :  { %v436_v9 = vsel %vm423_vm1, %v2489_v46, %v431_v36  ;;  %1355 = vst [vmem:[%s2874_s15 + $0x38] sm:$0xff] %v437_v16 }
 0x768   :  { %1354 = vst [vmem:[%s2874_s15 + $0x30] sm:$0xff] %v436_v9 }
 0x769   :  { %v642_v11 = vpop.permute.xlu1 %641 }
 0x76a   :  { %v640_v22 = vpop.permute.xlu0 %639  ;;  %v646_v15 = vsel %vm423_vm1, %v2611_v2, %v642_v11 }
 0x76b   :  { %v645_v13 = vsel %vm423_vm1, %v2602_v61, %v640_v22  ;;  %648 = vst [vmem:[%s2874_s15 + $0x18] sm:$0xff] %v646_v15 }
 0x76c   :  { %647 = vst [vmem:[%s2874_s15 + $0x10] sm:$0xff] %v645_v13 }
 0x76d   :  { %v654_v50 = vpop.permute.xlu1 %653 }
 0x76e   :  { %v652_v46 = vpop.permute.xlu0 %651  ;;  %v658_v19 = vsel %vm423_vm1, %v2631_v14, %v654_v50 }
 0x76f   :  { %v657_v17 = vsel %vm423_vm1, %v2620_v7, %v652_v46  ;;  %1362 = vst [vmem:[%s2874_s15 + $0x48] sm:$0xff] %v658_v19 }
 0x770   :  { %1361 = vst [vmem:[%s2874_s15 + $0x40] sm:$0xff] %v657_v17 }
 0x771   :  { %v816_v2 = vpop.permute.xlu1 %815 }
 0x772   :  { %v810_v61 = vpop.permute.xlu0 %809  ;;  %v818_v21 = vsel %vm423_vm1, %v2668_v25, %v816_v2  ;;  %v1258_v25 = vld [vmem:[%s2872_s13 + $0x38] sm:$0xff] }
 0x773   :  { %v812_v20 = vsel %vm423_vm1, %v2654_v62, %v810_v61  ;;  %1366 = vst [vmem:[%s2874_s15 + $0x50] sm:$0xff] %v818_v21  ;;  %v1257_v62 = vld [vmem:[%s2872_s13 + $0x30] sm:$0xff] }
 0x774   :  { %813 = vst [vmem:[%s2874_s15 + $0x20] sm:$0xff] %v812_v20 }
 0x775   :  { %v1117_v14 = vpop.permute.xlu1 %1116 }
 0x776   :  { %v965_v7 = vpop.permute.xlu0 %964  ;;  %v1119_v24 = vsel %vm423_vm1, %v2718_v43, %v1117_v14 }
 0x777   :  { %v967_v23 = vsel %vm423_vm1, %v2696_v40, %v965_v7  ;;  %1120 = vst [vmem:[%s2874_s15 + $0x2c] sm:$0x3] %v1119_v24  ;;  %1372 = vst [vmem:[%s2874_s15 + $0x5a] sm:$0xc] %v1119_v24  ;;  %v1824_v40 = vpack.c.bf16 %v1258_v25, %v1257_v62 }
 0x778   :  { %968 = vst [vmem:[%s2874_s15 + $0x28] ss:$48 sps:$4 sm:$0xff] %v967_v23  }
 0x779   :  { %1825 = vmatpush3.bf16.msra.mxu1 %v1824_v40 }
 0x836   :  { %v1237_v27 = vpop.f32.mrb[26].mxu0 }
 0x837   :  { %v1238_v28 = vadd.f32 %v1373_v26, %v1237_v27  ;;  %v1562_v31 = vpop.f32.mrb[27].mxu0 }
 0x839   :  { %vm1241_vm3 = vcmp.ge.f32.partialorder %v1238_v28, 0.0  ;;  %v1242_v33 = vmul.f32 0.2, %v1238_v28 }
 0x83b   :  { %v1243_v34 = vsel %vm1241_vm3, %v1238_v28, %v1242_v33 }
 0x83c   :  { %1245 = vrot.lane.b32.xlu0 %v1243_v34, %s1988_s2  ;;  %1580 = vmatmul.mubr.msk.f32.vlgmr.msra.gmra.mrb[14].mxu1 %vm423_vm1, %v1243_v34 }
 0x8ae   :  { %v1246_v35 = vpop.permute.xlu0 %1245 }
 0x8af   :  { %v1248_v37 = vsel %vm423_vm1, %v1238_v28, %v1246_v35 }
 0x8b0   :  { %1249 = vst [vmem:[%s2874_s15 + $0x2e] sm:$0x1] %v1248_v37  ;;  %1374 = vst [vmem:[%s2874_s15 + $0x5d] sm:$0x2] %v1248_v37 }
 0x90f   :  { %v1334_v41 = vpop.f32.mrb[14].mxu1 }
 0x910   :  { %v1335_v42 = vadd.f32 %v1375_v39, %v1334_v41  ;;  %v1581_v43 = vpop.f32.mrb[15].mxu1 }
 0x912   :  { %1339 = vrot.lane.b32.xlu1 %v1335_v42, %s1988_s2 }
 0x984   :  { %v1340_v44 = vpop.permute.xlu1 %1339 }
 0x985   :  { %v1342_v45 = vsel %vm423_vm1, %v1335_v42, %v1340_v44 }
 0x986   :  { %1343 = vst [vmem:[%s2874_s15 + $0x2f] sm:$0x1] %v1342_v45  ;;  %1377 = vst [vmem:[%s2874_s15 + $0x5e] sm:$0x2] %v1342_v45 }
 0x987   :  { %1349 = vsyncpa [#allocation8], 1 }
 0x988   :  { %1350 = vsyncpa [#allocation10], 1 }
 0x989   :  { %1351 = vsyncpa [#allocation13], 1 }
 0x98a   :  { %1352 = vsyncpa [#allocation16], 1 }

</bundles_post_ra>
